<compile_context>
chip_gen: v7x
topology: tpu7x:2x2x1
jax: 0.10.0
libtpu: 0.0.40
codegen_flags: <defaults>
</compile_context>

<pallas_src>
import math

import jax
import jax.numpy as jnp
from jax import lax
from jax.experimental import pallas as pl
from jax.experimental.pallas import tpu as pltpu

LEAK = 0.2
PIXELNORM_EPS = 1e-8


def mapping_kernel(x_ref, w_ref, b_ref, o_ref):
    """Full Mapping network for one batch tile in a single invocation.

    x_ref: (tb, Z)  input latents (f32)
    w_ref: (depth, Z, Z) bf16 weight stack, VMEM-resident (scale already folded)
    b_ref: (depth, 1, Z) f32 biases, VMEM-resident
    o_ref: (tb, Z)  output
    """
    depth = w_ref.shape[0]

    # PixelNorm in f32.
    x = x_ref[...].astype(jnp.float32)
    h32 = x * lax.rsqrt(jnp.mean(x * x, axis=-1, keepdims=True) + PIXELNORM_EPS)
    # Resident activation stays bf16: the MXU consumes bf16 operands anyway and
    # accumulates in f32 via preferred_element_type.
    h = h32.astype(jnp.bfloat16)

    # depth is a compile-time constant (8); fully unrolled static loop.
    for d in range(depth):
        y = jnp.dot(h, w_ref[d], preferred_element_type=jnp.float32) + b_ref[d]
        y = jnp.maximum(y, LEAK * y)          # LeakyReLU(0.2)
        h = y.astype(jnp.bfloat16)

    o_ref[...] = h.astype(o_ref.dtype)


def prepare_params(weights, biases):
    """One-time parameter prep (hoisted out of the per-call path):
    torch (depth, out, in) -> (depth, in, out), fold sqrt(2/fan_in), cast bf16."""
    depth, z_out, z_in = weights.shape
    scale = math.sqrt(2.0 / z_in)             # gain=sqrt(2), fan_in=z_in
    w_prep = (jnp.transpose(weights, (0, 2, 1)) * scale).astype(jnp.bfloat16)
    b_prep = biases.reshape(depth, 1, z_out).astype(jnp.float32)
    return w_prep, b_prep


def mapping_forward(x, w_prep, b_prep, *, batch_tile=128):
    """x: (B, Z) f32.  w_prep: (depth, Z, Z) bf16.  b_prep: (depth, 1, Z) f32."""
    B, Z = x.shape
    depth = w_prep.shape[0]
    tb = min(batch_tile, B)
    assert B % tb == 0, "batch must be divisible by the batch tile"

    # VMEM budget: resident bf16 weight stack (+ pipelining buffer), f32 biases,
    # double-buffered input/output tiles, and in-kernel activation temporaries.
    vmem_need = (
        2 * depth * Z * Z * 2        # weights (bf16), possible double buffer
        + 2 * depth * Z * 4          # biases (f32)
        + 4 * tb * Z * 4             # x / out tiles, double-buffered
        + 2 * tb * Z * 4             # activation temporaries
    )
    vmem_limit = max(4 << 20, min(2 * vmem_need, 32 << 20))

    return pl.pallas_call(
        mapping_kernel,
        out_shape=jax.ShapeDtypeStruct((B, Z), x.dtype),
        grid_spec=pltpu.PrefetchScalarGridSpec(
            num_scalar_prefetch=0,
            grid=(B // tb,),                                     # batch tiles only
            in_specs=[
                pl.BlockSpec((tb, Z), lambda i: (i, 0)),         # latent tile
                pl.BlockSpec((depth, Z, Z), lambda i: (0, 0, 0)),  # resident weights
                pl.BlockSpec((depth, 1, Z), lambda i: (0, 0, 0)),  # resident biases
            ],
            out_specs=pl.BlockSpec((tb, Z), lambda i: (i, 0)),
        ),
        compiler_params=pltpu.CompilerParams(
            # Batch tiles are independent -> shard across TCs on v7x.
            dimension_semantics=("parallel",),
            vmem_limit_bytes=vmem_limit,
        ),
    )(x, w_prep, b_prep)


if __name__ == "__main__":
    # TPU-tile-friendly shapes consistent with the module: zdim=128 (vs 512),
    # depth=8, batch=256 so each batch tile gives the MXU a real M dimension
    # and the parallel axis has >1 tile for the v7x second TensorCore.
    B, Z, DEPTH = 256, 128, 8

    key = jax.random.PRNGKey(0)
    kx, kw = jax.random.split(key)
    x = jax.random.normal(kx, (B, Z), dtype=jnp.float32)
    # EqualizedLinear: torch-layout (out, in) weights ~ N(0,1); bias = 0.
    weights = jax.random.normal(kw, (DEPTH, Z, Z), dtype=jnp.float32)
    biases = jnp.zeros((DEPTH, Z), dtype=jnp.float32)

    w_prep, b_prep = prepare_params(weights, biases)

    out = jax.block_until_ready(mapping_forward(x, w_prep, b_prep))
    assert out.shape == (B, Z) and out.dtype == x.dtype

    # (a) Exact pure-JAX mirror of the kernel math (bf16 weights/activations,
    #     f32 accumulation, bf16 carry) -- tight structural check.
    def ref_mirror(xv):
        h = xv * lax.rsqrt(jnp.mean(xv * xv, axis=-1, keepdims=True) + PIXELNORM_EPS)
        h = h.astype(jnp.bfloat16)
        for i in range(DEPTH):
            y = jnp.dot(h, w_prep[i], preferred_element_type=jnp.float32) + b_prep[i]
            h = jnp.maximum(y, LEAK * y).astype(jnp.bfloat16)
        return h.astype(jnp.float32)

    # (b) Full-f32 torch-module semantics -- loose check (kernel uses bf16
    #     weights/activations at the dots, so small numeric drift is expected).
    def ref_f32(xv):
        h = xv * lax.rsqrt(jnp.mean(xv * xv, axis=-1, keepdims=True) + PIXELNORM_EPS)
        s = math.sqrt(2.0 / Z)
        for i in range(DEPTH):
            y = h @ (weights[i] * s).T + biases[i]
            h = jnp.where(y > 0, y, LEAK * y)
        return h

    assert jnp.allclose(out, ref_mirror(x), atol=5e-3, rtol=5e-3)
    assert jnp.allclose(out, ref_f32(x), atol=1e-1, rtol=5e-2)
    print("KERNEL_OK")
</pallas_src>

<mosaic_0001>
module attributes {stable_mosaic.version = 11 : i64} {
  func.func @mapping_kernel(%arg0: i32, %arg1: memref<128x128xf32, #tpu.memory_space<vmem>>, %arg2: memref<8x128x128xbf16, #tpu.memory_space<vmem>>, %arg3: memref<8x1x128xf32, #tpu.memory_space<vmem>>, %arg4: memref<128x128xf32, #tpu.memory_space<vmem>>) attributes {dimension_semantics = [#tpu.dimension_semantics<parallel>], iteration_bounds = array<i64: 2>, scalar_prefetch = 0 : i64, scratch_operands = 0 : i64, tpu.core_type = #tpu.core_type<tc>, window_params = [{transform_indices = @transform_0, window_bounds = array<i64: 128, 128>}, {pipeline_mode = #tpu.pipeline_mode<synchronous>, transform_indices = @transform_1, window_bounds = array<i64: 8, 128, 128>}, {pipeline_mode = #tpu.pipeline_mode<synchronous>, transform_indices = @transform_2, window_bounds = array<i64: 8, 1, 128>}, {transform_indices = @transform_3, window_bounds = array<i64: 128, 128>}]} {
    %c0 = arith.constant 0 : index
    %c0_0 = arith.constant 0 : index
    %0 = vector.load %arg1[%c0, %c0_0] : memref<128x128xf32, #tpu.memory_space<vmem>>, vector<128x128xf32>
    %1 = arith.mulf %0, %0 : vector<128x128xf32>
    %cst = arith.constant dense<0.000000e+00> : vector<128xf32>
    %2 = vector.multi_reduction <add>, %1, %cst [1] : vector<128x128xf32> to vector<128xf32>
    %3 = vector.shape_cast %2 : vector<128xf32> to vector<128x1xf32>
    %cst_1 = arith.constant 1.280000e+02 : f32
    %4 = vector.broadcast %cst_1 : f32 to vector<128x1xf32>
    %5 = arith.divf %3, %4 : vector<128x1xf32>
    %cst_2 = arith.constant 9.99999993E-9 : f32
    %6 = vector.broadcast %cst_2 : f32 to vector<128x1xf32>
    %7 = arith.addf %5, %6 : vector<128x1xf32>
    %8 = math.rsqrt %7 : vector<128x1xf32>
    %9 = vector.broadcast %8 : vector<128x1xf32> to vector<128x128xf32>
    %10 = arith.mulf %0, %9 : vector<128x128xf32>
    %11 = arith.truncf %10 : vector<128x128xf32> to vector<128x128xbf16>
    %c0_3 = arith.constant 0 : index
    %c0_4 = arith.constant 0 : index
    %c0_5 = arith.constant 0 : index
    %12 = vector.load %arg2[%c0_3, %c0_4, %c0_5] : memref<8x128x128xbf16, #tpu.memory_space<vmem>>, vector<1x128x128xbf16>
    %13 = vector.shape_cast %12 : vector<1x128x128xbf16> to vector<128x128xbf16>
    %cst_6 = arith.constant dense<0.000000e+00> : vector<128x128xf32>
    %14 = tpu.matmul %11, %13, %cst_6 {dimension_numbers = #tpu.dot_dimension_numbers<[1], [0], [0], [1], [0, 0, 1, 1], [], []>} : vector<128x128xbf16>, vector<128x128xbf16>, vector<128x128xf32> -> vector<128x128xf32>
    %c0_7 = arith.constant 0 : index
    %c0_8 = arith.constant 0 : index
    %c0_9 = arith.constant 0 : index
    %15 = vector.load %arg3[%c0_7, %c0_8, %c0_9] : memref<8x1x128xf32, #tpu.memory_space<vmem>>, vector<1x1x128xf32>
    %16 = vector.shape_cast %15 : vector<1x1x128xf32> to vector<1x128xf32>
    %17 = vector.broadcast %16 : vector<1x128xf32> to vector<128x128xf32>
    %18 = arith.addf %14, %17 : vector<128x128xf32>
    %cst_10 = arith.constant 2.000000e-01 : f32
    %19 = vector.broadcast %cst_10 : f32 to vector<128x128xf32>
    %20 = arith.mulf %19, %18 : vector<128x128xf32>
    %21 = arith.maximumf %18, %20 : vector<128x128xf32>
    %22 = arith.truncf %21 : vector<128x128xf32> to vector<128x128xbf16>
    %c1 = arith.constant 1 : index
    %c0_11 = arith.constant 0 : index
    %c0_12 = arith.constant 0 : index
    %23 = vector.load %arg2[%c1, %c0_11, %c0_12] : memref<8x128x128xbf16, #tpu.memory_space<vmem>>, vector<1x128x128xbf16>
    %24 = vector.shape_cast %23 : vector<1x128x128xbf16> to vector<128x128xbf16>
    %cst_13 = arith.constant dense<0.000000e+00> : vector<128x128xf32>
    %25 = tpu.matmul %22, %24, %cst_13 {dimension_numbers = #tpu.dot_dimension_numbers<[1], [0], [0], [1], [0, 0, 1, 1], [], []>} : vector<128x128xbf16>, vector<128x128xbf16>, vector<128x128xf32> -> vector<128x128xf32>
    %c1_14 = arith.constant 1 : index
    %c0_15 = arith.constant 0 : index
    %c0_16 = arith.constant 0 : index
    %26 = vector.load %arg3[%c1_14, %c0_15, %c0_16] : memref<8x1x128xf32, #tpu.memory_space<vmem>>, vector<1x1x128xf32>
    %27 = vector.shape_cast %26 : vector<1x1x128xf32> to vector<1x128xf32>
    %28 = vector.broadcast %27 : vector<1x128xf32> to vector<128x128xf32>
    %29 = arith.addf %25, %28 : vector<128x128xf32>
    %cst_17 = arith.constant 2.000000e-01 : f32
    %30 = vector.broadcast %cst_17 : f32 to vector<128x128xf32>
    %31 = arith.mulf %30, %29 : vector<128x128xf32>
    %32 = arith.maximumf %29, %31 : vector<128x128xf32>
    %33 = arith.truncf %32 : vector<128x128xf32> to vector<128x128xbf16>
    %c2 = arith.constant 2 : index
    %c0_18 = arith.constant 0 : index
    %c0_19 = arith.constant 0 : index
    %34 = vector.load %arg2[%c2, %c0_18, %c0_19] : memref<8x128x128xbf16, #tpu.memory_space<vmem>>, vector<1x128x128xbf16>
    %35 = vector.shape_cast %34 : vector<1x128x128xbf16> to vector<128x128xbf16>
    %cst_20 = arith.constant dense<0.000000e+00> : vector<128x128xf32>
    %36 = tpu.matmul %33, %35, %cst_20 {dimension_numbers = #tpu.dot_dimension_numbers<[1], [0], [0], [1], [0, 0, 1, 1], [], []>} : vector<128x128xbf16>, vector<128x128xbf16>, vector<128x128xf32> -> vector<128x128xf32>
    %c2_21 = arith.constant 2 : index
    %c0_22 = arith.constant 0 : index
    %c0_23 = arith.constant 0 : index
    %37 = vector.load %arg3[%c2_21, %c0_22, %c0_23] : memref<8x1x128xf32, #tpu.memory_space<vmem>>, vector<1x1x128xf32>
    %38 = vector.shape_cast %37 : vector<1x1x128xf32> to vector<1x128xf32>
    %39 = vector.broadcast %38 : vector<1x128xf32> to vector<128x128xf32>
    %40 = arith.addf %36, %39 : vector<128x128xf32>
    %cst_24 = arith.constant 2.000000e-01 : f32
    %41 = vector.broadcast %cst_24 : f32 to vector<128x128xf32>
    %42 = arith.mulf %41, %40 : vector<128x128xf32>
    %43 = arith.maximumf %40, %42 : vector<128x128xf32>
    %44 = arith.truncf %43 : vector<128x128xf32> to vector<128x128xbf16>
    %c3 = arith.constant 3 : index
    %c0_25 = arith.constant 0 : index
    %c0_26 = arith.constant 0 : index
    %45 = vector.load %arg2[%c3, %c0_25, %c0_26] : memref<8x128x128xbf16, #tpu.memory_space<vmem>>, vector<1x128x128xbf16>
    %46 = vector.shape_cast %45 : vector<1x128x128xbf16> to vector<128x128xbf16>
    %cst_27 = arith.constant dense<0.000000e+00> : vector<128x128xf32>
    %47 = tpu.matmul %44, %46, %cst_27 {dimension_numbers = #tpu.dot_dimension_numbers<[1], [0], [0], [1], [0, 0, 1, 1], [], []>} : vector<128x128xbf16>, vector<128x128xbf16>, vector<128x128xf32> -> vector<128x128xf32>
    %c3_28 = arith.constant 3 : index
    %c0_29 = arith.constant 0 : index
    %c0_30 = arith.constant 0 : index
    %48 = vector.load %arg3[%c3_28, %c0_29, %c0_30] : memref<8x1x128xf32, #tpu.memory_space<vmem>>, vector<1x1x128xf32>
    %49 = vector.shape_cast %48 : vector<1x1x128xf32> to vector<1x128xf32>
    %50 = vector.broadcast %49 : vector<1x128xf32> to vector<128x128xf32>
    %51 = arith.addf %47, %50 : vector<128x128xf32>
    %cst_31 = arith.constant 2.000000e-01 : f32
    %52 = vector.broadcast %cst_31 : f32 to vector<128x128xf32>
    %53 = arith.mulf %52, %51 : vector<128x128xf32>
    %54 = arith.maximumf %51, %53 : vector<128x128xf32>
    %55 = arith.truncf %54 : vector<128x128xf32> to vector<128x128xbf16>
    %c4 = arith.constant 4 : index
    %c0_32 = arith.constant 0 : index
    %c0_33 = arith.constant 0 : index
    %56 = vector.load %arg2[%c4, %c0_32, %c0_33] : memref<8x128x128xbf16, #tpu.memory_space<vmem>>, vector<1x128x128xbf16>
    %57 = vector.shape_cast %56 : vector<1x128x128xbf16> to vector<128x128xbf16>
    %cst_34 = arith.constant dense<0.000000e+00> : vector<128x128xf32>
    %58 = tpu.matmul %55, %57, %cst_34 {dimension_numbers = #tpu.dot_dimension_numbers<[1], [0], [0], [1], [0, 0, 1, 1], [], []>} : vector<128x128xbf16>, vector<128x128xbf16>, vector<128x128xf32> -> vector<128x128xf32>
    %c4_35 = arith.constant 4 : index
    %c0_36 = arith.constant 0 : index
    %c0_37 = arith.constant 0 : index
    %59 = vector.load %arg3[%c4_35, %c0_36, %c0_37] : memref<8x1x128xf32, #tpu.memory_space<vmem>>, vector<1x1x128xf32>
    %60 = vector.shape_cast %59 : vector<1x1x128xf32> to vector<1x128xf32>
    %61 = vector.broadcast %60 : vector<1x128xf32> to vector<128x128xf32>
    %62 = arith.addf %58, %61 : vector<128x128xf32>
    %cst_38 = arith.constant 2.000000e-01 : f32
    %63 = vector.broadcast %cst_38 : f32 to vector<128x128xf32>
    %64 = arith.mulf %63, %62 : vector<128x128xf32>
    %65 = arith.maximumf %62, %64 : vector<128x128xf32>
    %66 = arith.truncf %65 : vector<128x128xf32> to vector<128x128xbf16>
    %c5 = arith.constant 5 : index
    %c0_39 = arith.constant 0 : index
    %c0_40 = arith.constant 0 : index
    %67 = vector.load %arg2[%c5, %c0_39, %c0_40] : memref<8x128x128xbf16, #tpu.memory_space<vmem>>, vector<1x128x128xbf16>
    %68 = vector.shape_cast %67 : vector<1x128x128xbf16> to vector<128x128xbf16>
    %cst_41 = arith.constant dense<0.000000e+00> : vector<128x128xf32>
    %69 = tpu.matmul %66, %68, %cst_41 {dimension_numbers = #tpu.dot_dimension_numbers<[1], [0], [0], [1], [0, 0, 1, 1], [], []>} : vector<128x128xbf16>, vector<128x128xbf16>, vector<128x128xf32> -> vector<128x128xf32>
    %c5_42 = arith.constant 5 : index
    %c0_43 = arith.constant 0 : index
    %c0_44 = arith.constant 0 : index
    %70 = vector.load %arg3[%c5_42, %c0_43, %c0_44] : memref<8x1x128xf32, #tpu.memory_space<vmem>>, vector<1x1x128xf32>
    %71 = vector.shape_cast %70 : vector<1x1x128xf32> to vector<1x128xf32>
    %72 = vector.broadcast %71 : vector<1x128xf32> to vector<128x128xf32>
    %73 = arith.addf %69, %72 : vector<128x128xf32>
    %cst_45 = arith.constant 2.000000e-01 : f32
    %74 = vector.broadcast %cst_45 : f32 to vector<128x128xf32>
    %75 = arith.mulf %74, %73 : vector<128x128xf32>
    %76 = arith.maximumf %73, %75 : vector<128x128xf32>
    %77 = arith.truncf %76 : vector<128x128xf32> to vector<128x128xbf16>
    %c6 = arith.constant 6 : index
    %c0_46 = arith.constant 0 : index
    %c0_47 = arith.constant 0 : index
    %78 = vector.load %arg2[%c6, %c0_46, %c0_47] : memref<8x128x128xbf16, #tpu.memory_space<vmem>>, vector<1x128x128xbf16>
    %79 = vector.shape_cast %78 : vector<1x128x128xbf16> to vector<128x128xbf16>
    %cst_48 = arith.constant dense<0.000000e+00> : vector<128x128xf32>
    %80 = tpu.matmul %77, %79, %cst_48 {dimension_numbers = #tpu.dot_dimension_numbers<[1], [0], [0], [1], [0, 0, 1, 1], [], []>} : vector<128x128xbf16>, vector<128x128xbf16>, vector<128x128xf32> -> vector<128x128xf32>
    %c6_49 = arith.constant 6 : index
    %c0_50 = arith.constant 0 : index
    %c0_51 = arith.constant 0 : index
    %81 = vector.load %arg3[%c6_49, %c0_50, %c0_51] : memref<8x1x128xf32, #tpu.memory_space<vmem>>, vector<1x1x128xf32>
    %82 = vector.shape_cast %81 : vector<1x1x128xf32> to vector<1x128xf32>
    %83 = vector.broadcast %82 : vector<1x128xf32> to vector<128x128xf32>
    %84 = arith.addf %80, %83 : vector<128x128xf32>
    %cst_52 = arith.constant 2.000000e-01 : f32
    %85 = vector.broadcast %cst_52 : f32 to vector<128x128xf32>
    %86 = arith.mulf %85, %84 : vector<128x128xf32>
    %87 = arith.maximumf %84, %86 : vector<128x128xf32>
    %88 = arith.truncf %87 : vector<128x128xf32> to vector<128x128xbf16>
    %c7 = arith.constant 7 : index
    %c0_53 = arith.constant 0 : index
    %c0_54 = arith.constant 0 : index
    %89 = vector.load %arg2[%c7, %c0_53, %c0_54] : memref<8x128x128xbf16, #tpu.memory_space<vmem>>, vector<1x128x128xbf16>
    %90 = vector.shape_cast %89 : vector<1x128x128xbf16> to vector<128x128xbf16>
    %cst_55 = arith.constant dense<0.000000e+00> : vector<128x128xf32>
    %91 = tpu.matmul %88, %90, %cst_55 {dimension_numbers = #tpu.dot_dimension_numbers<[1], [0], [0], [1], [0, 0, 1, 1], [], []>} : vector<128x128xbf16>, vector<128x128xbf16>, vector<128x128xf32> -> vector<128x128xf32>
    %c7_56 = arith.constant 7 : index
    %c0_57 = arith.constant 0 : index
    %c0_58 = arith.constant 0 : index
    %92 = vector.load %arg3[%c7_56, %c0_57, %c0_58] : memref<8x1x128xf32, #tpu.memory_space<vmem>>, vector<1x1x128xf32>
    %93 = vector.shape_cast %92 : vector<1x1x128xf32> to vector<1x128xf32>
    %94 = vector.broadcast %93 : vector<1x128xf32> to vector<128x128xf32>
    %95 = arith.addf %91, %94 : vector<128x128xf32>
    %cst_59 = arith.constant 2.000000e-01 : f32
    %96 = vector.broadcast %cst_59 : f32 to vector<128x128xf32>
    %97 = arith.mulf %96, %95 : vector<128x128xf32>
    %98 = arith.maximumf %95, %97 : vector<128x128xf32>
    %99 = arith.truncf %98 : vector<128x128xf32> to vector<128x128xbf16>
    %100 = arith.extf %99 : vector<128x128xbf16> to vector<128x128xf32>
    %c0_60 = arith.constant 0 : index
    %c0_61 = arith.constant 0 : index
    %101 = vector.load %arg4[%c0_60, %c0_61] : memref<128x128xf32, #tpu.memory_space<vmem>>, vector<128x128xf32>
    tpu.vector_store %arg4[%c0_60, %c0_61], %100 {strides = array<i32>} : memref<128x128xf32, #tpu.memory_space<vmem>>, vector<128x128xf32>,
    return
  }
  func.func @transform_0(%arg0: i32) -> (i32, i32) {
    %c0_i32 = arith.constant 0 : i32
    %c0_i32_0 = arith.constant 0 : i32
    return %arg0, %c0_i32 : i32, i32
  }
  func.func @transform_1(%arg0: i32) -> (i32, i32, i32) {
    %c0_i32 = arith.constant 0 : i32
    %c0_i32_0 = arith.constant 0 : i32
    %c0_i32_1 = arith.constant 0 : i32
    %c0_i32_2 = arith.constant 0 : i32
    return %c0_i32, %c0_i32_0, %c0_i32_1 : i32, i32, i32
  }
  func.func @transform_2(%arg0: i32) -> (i32, i32, i32) {
    %c0_i32 = arith.constant 0 : i32
    %c0_i32_0 = arith.constant 0 : i32
    %c0_i32_1 = arith.constant 0 : i32
    %c0_i32_2 = arith.constant 0 : i32
    return %c0_i32, %c0_i32_0, %c0_i32_1 : i32, i32, i32
  }
  func.func @transform_3(%arg0: i32) -> (i32, i32) {
    %c0_i32 = arith.constant 0 : i32
    %c0_i32_0 = arith.constant 0 : i32
    return %arg0, %c0_i32 : i32, i32
  }
}

</mosaic_0001>

<bundles_post_ra>
// kernel: tpu_custom_call.1
= control target key start
LH: loop header
LB: loop body
LE: loop exit
PB: predicated region body
PF: predicated region fallthrough
CT: control target
= control target key end

     0   :  { %8 = vsyncpa [#allocation3], 0  ;;  %s3510_s0 = inlined_call_operand.hbm [shape: f32[256,128], index: 0, kind: input, shape index: {}]   ;;  %s3511_s1 = inlined_call_operand.hbm [shape: bf16[8,128,128], index: 1, kind: input, shape index: {}]   ;;  %s3512_s2 = inlined_call_operand.hbm [shape: f32[8,1,128], index: 2, kind: input, shape index: {}]   ;;  %s3513_s3 = inlined_call_operand.hbm [shape: f32[256,128], index: 3, kind: output, shape index: {}]  }
   0x1   :  { %10 = vsyncpa [#allocation3 + $0x1], 0 }
   0x2   :  { %11 = vsyncpa [#allocation6], 0 }
   0x3   :  { %12 = vsyncpa [#allocation4], 0 }
   0x4   :  { %14 = vsyncpa [#allocation4 + $0x1], 0  ;;  %s3011_s12 = smov 0   ;;  %s3013_s13 = smov 0  }
   0x5   :  { %s3015_s14 = smov 0   ;;  %s3017_s15 = smov 0  }
   0x6 LB: > { %s3032_s16 = sadd.s32 4294967295, %s2977_s15   ;;  %s2174_s17 = sadd.s32 4294967294, %s2977_s15   ;;  %s2977_s15 = sphi %s3017_s15, %s3533_s15   ;;  %s2973_s14 = sphi %s3015_s14, %s3532_s14   ;;  %s2969_s13 = sphi %s3013_s13, %s3531_s13   ;;  %s2965_s12 = sphi %s3011_s12, %s3530_s12  }
   0x7   : > { %p40_p0 = scmp.ne.s32.totalorder %s2969_s13, %s2965_s12  ;;  %p3514_p1 = scmp.eq.s32.totalorder %s3032_s16, 0 }
   0x8   : > { %p112_p3 = scmp.eq.s32.totalorder %s2174_s17, 1  ;;  %p2175_p5 = scmp.ge.s32.totalorder %s2977_s15, 1 }
   0x9   : > { %p3041_p4 = por %p3514_p1, %p40_p0  ;;  %p119_p7 = scmp.lt.s32.totalorder %s2977_s15, 3 }
   0xa   : > { %p3046_p6 = por %p112_p3, %p40_p0  ;;  %s2979_s21 = smov [#allocation5]  }
   0xb   : > { %s3517_s18 = scalar_select %p3041_p4, 1, 0 }
   0xc   : > { %s3518_s19 = scalar_select %p3046_p6, 1, 0 }
   0xd   : > { %p3051_p8 = pnand %p2175_p5, %p119_p7  ;;  %s131_s22 = sshll.u32 %s2979_s21, 4  ;;  %s3055_s22 = int_to_ptr.vmem [resolvable:$true] %s131_s22 }
   0xe   : > { %s2980_s24 = smov [#allocation7]   ;;  %s2821_s28 = scalar_lea.hbm %s3511_s1, 8192 }
   0xf   : > { %p2662_p9 = pneg %p3051_p8  ;;  %s144_s25 = sshll.u32 %s2980_s24, 4  ;;  %s3066_s25 = int_to_ptr.vmem [resolvable:$true] %s144_s25 }
  0x10   : > { %p2822_p12 = scmp.ne.s32.totalorder %s3511_s1, %s2821_s28  ;;  %p2828_p5 = scmp.lt.u32.totalorder %s2821_s28, %s3511_s1 }
  0x11   : > { %p3062_p11 = pnand %p2662_p9, %p3514_p1 }
  0x13   : > { %p2823_p13 = pneg %p3062_p11 }
  0x15   : > { %p2824_p0 = pnand %p2823_p13, %p2822_p12 }
  0x17   : > { %p2825_p3 = pneg %p2824_p0 }
  0x19   : > { %p2830_p7 = pnand %p2828_p5, %p2825_p3 }
  0x1b   : > { %2833 = shalt.err (!%p2830_p7)
}
  0x1c   : > { %s2834_s6 = scalar_lea.vmem %s3055_s22, 8192  ;;  %p2842_p2 = scmp.lt.s32.totalorder %s3055_s22, %s3055_s22 }
  0x1d   : > { %p2835_p9 = scmp.ne.s32.totalorder %s3055_s22, %s2834_s6  ;;  %p2843_p12 = scmp.lt.s32.totalorder %s2834_s6, %s2834_s6 }
  0x1f   : > { %p2837_p10 = pnand %p2835_p9, %p2823_p13  ;;  %p2844_p0 = por %p2843_p12, %p2842_p2 }
  0x21   : > { %p2838_p1 = pneg %p2837_p10 }
  0x23   : > { %p2845_p6 = pnand %p2844_p0, %p2838_p1 }
  0x25   : > { %2848 = shalt.err (!%p2845_p6)
}
  0x26   : > { %s2981_s7 = smov 64   ;;  %s2982_s8 = smov 4  }
  0x27   : > { %2665 = dma.hbm_to_vmem [thread:$0]  (!%p3062_p11), %s3511_s1, 8192, %s3055_s22, [#allocation6], %s2981_s7, %s2981_s7, %s2982_s8  }
  0x28   : > { %s2849_s21 = scalar_lea.hbm %s3512_s2, 128 }
  0x29   : > { %p2850_p2 = scmp.ne.s32.totalorder %s3512_s2, %s2849_s21  ;;  %p2856_p10 = scmp.lt.u32.totalorder %s2849_s21, %s3512_s2 }
  0x2b   : > { %p2852_p1 = pnand %p2850_p2, %p2823_p13 }
  0x2d   : > { %p2853_p6 = pneg %p2852_p1 }
  0x2f   : > { %p2858_p3 = pnand %p2856_p10, %p2853_p6 }
  0x31   : > { %2861 = shalt.err (!%p2858_p3)
}
  0x32   : > { %s2862_s22 = scalar_lea.vmem %s3066_s25, 128  ;;  %p2870_p12 = scmp.lt.s32.totalorder %s3066_s25, %s3066_s25 }
  0x33   : > { %p2863_p5 = scmp.ne.s32.totalorder %s3066_s25, %s2862_s22  ;;  %p2871_p0 = scmp.lt.s32.totalorder %s2862_s22, %s2862_s22 }
  0x35   : > { %p2865_p7 = pnand %p2863_p5, %p2823_p13  ;;  %p2872_p2 = por %p2871_p0, %p2870_p12 }
  0x37   : > { %p2866_p9 = pneg %p2865_p7 }
  0x39   : > { %p2873_p1 = pnand %p2872_p2, %p2866_p9 }
  0x3b   : > { %2876 = shalt.err (!%p2873_p1)
}
  0x3c   : > { %s2983_s29 = smov 16   ;;  %s2984_s30 = smov 1  }
  0x3d   : > { %2668 = dma.hbm_to_vmem [thread:$0]  (!%p3062_p11), %s3512_s2, 128, %s3066_s25, [#allocation6], %s2983_s29, %s2983_s29, %s2984_s30  }
  0x3e   : > { %s3121_s6 = sadd.s32 1, %s2977_s15   ;;  %s27_s8 = sadd.s32 1, %s2973_s14 }
  0x3f   : > { %s24_s7 = ssub.s32 %s2977_s15, %s3121_s6  ;;  %p34_p6 = scmp.ne.s32.totalorder %s2973_s14, %s2969_s13 }
  0x40   : > { %p25_p13 = scmp.eq.s32.totalorder %s24_s7, 0  ;;  %p35_p10 = scmp.eq.s32.totalorder %s2977_s15, 0 }
  0x41   : > { %p3521_p5 = scmp.eq.s32.totalorder %s3032_s16, 1  ;;  %p2679_p9 = scmp.lt.s32.totalorder %s2977_s15, 2 }
  0x42   : > { %s3130_s9 = scalar_select %p25_p13, %s2973_s14, %s27_s8  }
  0x43   : > { %p36_p3 = por %p35_p10, %p34_p6  ;;  %p3134_p7 = por %p3521_p5, %p34_p6 }
  0x44   : > { %s158_s23 = sand.u32 1, %s2973_s14   ;;  %s2264_s25 = sshll.u32 %s2977_s15, 11 }
  0x45   : > { %s3522_s10 = scalar_select %p3134_p7, 1, 0 }
  0x46   : > { %s2179_s11 = sshll.u32 %s158_s23, 7  ;;  %s3144_s24 = scalar_lea.hbm %s3510_s0, %s2264_s25 }
  0x47   : > { %s162_s26 = scalar_lea.vmem [#allocation2], %s2179_s11  ;;  %p3148_p11 = pnand %p2679_p9, %p36_p3 }
  0x48   : > { %s169_s27 = sshll.u32 %s162_s26, 4  ;;  %s3152_s22 = scalar_lea.sflag [#allocation3], %s158_s23  ;;  %s3146_s27 = int_to_ptr.vmem [resolvable:$true] %s169_s27 }
  0x49   : > { %s2877_s29 = scalar_lea.hbm %s3144_s24, 2048  ;;  %p2879_p0 = pneg %p3148_p11 }
  0x4a   : > { %p2878_p12 = scmp.ne.s32.totalorder %s3144_s24, %s2877_s29  ;;  %s2882_s5 = scalar_lea.hbm %s3510_s0, 4096 }
  0x4b   : > { %p2883_p13 = scmp.lt.u32.totalorder %s3144_s24, %s3510_s0  ;;  %p2884_p6 = scmp.lt.u32.totalorder %s2882_s5, %s2877_s29 }
  0x4c   : > { %p2880_p2 = pnand %p2879_p0, %p2878_p12  ;;  %p2886_p3 = scmp.lt.u32.totalorder %s2877_s29, %s3144_s24 }
  0x4d   : > { %p2885_p10 = por %p2884_p6, %p2883_p13 }
  0x4e   : > { %p2881_p1 = pneg %p2880_p2 }
  0x4f   : > { %p2887_p5 = por %p2886_p3, %p2885_p10 }
  0x51   : > { %p2888_p9 = pnand %p2887_p5, %p2881_p1 }
  0x53   : > { %2891 = shalt.err (!%p2888_p9)
}
  0x54   : > { %s2892_s23 = scalar_lea.vmem %s3146_s27, 2048  ;;  %s2985_s11 = smov [#allocation2]  }
  0x55   : > { %p2893_p12 = scmp.ne.s32.totalorder %s3146_s27, %s2892_s23  ;;  %s2897_s25 = sshll.u32 %s2985_s11, 4  ;;  %s2898_s25 = int_to_ptr.vmem [resolvable:$false] %s2897_s25 }
  0x56   : > { %s2899_s17 = scalar_lea.vmem %s2898_s25, 4096  ;;  %p2900_p4 = scmp.lt.s32.totalorder %s3146_s27, %s2898_s25 }
  0x57   : > { %p2895_p2 = pnand %p2893_p12, %p2879_p0  ;;  %p2901_p13 = scmp.lt.s32.totalorder %s2899_s17, %s2892_s23 }
  0x59   : > { %p2896_p7 = pneg %p2895_p2  ;;  %p2902_p6 = por %p2901_p13, %p2900_p4 }
  0x5b   : > { %p2903_p10 = pnand %p2902_p6, %p2896_p7 }
  0x5d   : > { %2906 = shalt.err (!%p2903_p10)
}
  0x5e   : > { %s2986_s21 = smov 128   ;;  %s2987_s26 = smov 8  }
  0x5f   : > { %2672 = dma.hbm_to_vmem [thread:$0]  (!%p3148_p11), %s3144_s24, 2048, %s3146_s27, %s3152_s22, %s2986_s21, %s2986_s21, %s2987_s26  }
  0x60   : > { %181 = sbr.rel (%p3051_p8) target bundleno = 2109 (0x83d), region = 32  ;;  %s3183_s29 = sand.u32 (!%p3051_p8), 1, %s2969_s13  }
  0x61   : > { %s2183_s30 = sshll.u32 (!%p3051_p8), %s3183_s29, 7  ;;  %s184_s4 = scalar_lea.sflag (!%p3051_p8), [#allocation3], %s3183_s29 }
  0x62   : > { %s3189_s5 = scalar_lea.vmem (!%p3051_p8), [#allocation2], %s2183_s30  ;;  %p3524_p4 = scmp.ne.s32.totalorder (!%p3051_p8), %s3517_s18, 0 }
  0x67   : > { %2952 = dma.done.wait (%p3524_p4), %s184_s4, 2048  }
  0x68   : > { %2954 = vsyncadd (%p3524_p4), %s184_s4, 4294965248  ;;  %p3525_p7 = scmp.eq.s32.totalorder %s3032_s16, 0 }
  0x6a   : > { %2956 = dma.done.wait (%p3525_p7), [#allocation6], 8320   ;;  %p3526_p8 = pmov %p3525_p7 }
  0x6b   : > { %v3200_v0 = vld [vmem:[%s3189_s5 + $0x10] sm:$0xff]  ;;  %v3203_v1 = vld [vmem:[%s3189_s5] sm:$0xff]  ;;  %v3206_v2 = vld [vmem:[%s3189_s5 + $0x18] sm:$0xff]  ;;  %s3433_s18 = scalar_lea.vmem [#allocation8], %s2183_s30  ;;  %s2265_s20 = sshll.u32 %s3032_s16, 11 }
  0x6c   : > { %2958 = vsyncadd (%p3526_p8), [#allocation6], 4294958976  ;;  %v239_v3 = vmul.f32 %v3200_v0, %v3200_v0  ;;  %v237_v4 = vmul.f32 %v3203_v1, %v3203_v1  ;;  %v3213_v5 = vld [vmem:[%s3189_s5 + $0x8] sm:$0xff]  ;;  %v240_v6 = vmul.f32 %v3206_v2, %v3206_v2  ;;  %v3223_v9 = vld [vmem:[%s3189_s5 + $0x20] sm:$0xff]  ;;  %s2082_s24 = sshll.u32 %s3433_s18, 4  ;;  %s3460_s22 = scalar_lea.hbm %s3513_s3, %s2265_s20  ;;  %s3462_s24 = int_to_ptr.vmem [resolvable:$true] %s2082_s24 }
  0x6d   : > { %v238_v7 = vmul.f32 %v3213_v5, %v3213_v5  ;;  %v3220_v8 = vld [vmem:[%s3189_s5 + $0x28] sm:$0xff]  ;;  %v3226_v10 = vld [vmem:[%s3189_s5 + $0x38] sm:$0xff]  ;;  %v3229_v11 = vld [vmem:[%s3189_s5 + $0x30] sm:$0xff]  ;;  %v241_v14 = vmul.f32 %v3223_v9, %v3223_v9  ;;  %s2069_s16 = scalar_lea.sflag [#allocation4], %s3183_s29  ;;  %s2907_s7 = scalar_lea.vmem %s3462_s24, 2048 }
  0x6e   : > { %257 = vadd.xlane.f32.xlu1 %v239_v3  ;;  %253 = vadd.xlane.f32.xlu0 %v237_v4  ;;  %v2725_v12 = vld [vmem:[#allocation5] sm:$0xff]   ;;  %v242_v13 = vmul.f32 %v3220_v8, %v3220_v8  ;;  %v2726_v15 = vld [vmem:[#allocation5 + $0x8] sm:$0xff]   ;;  %v244_v18 = vmul.f32 %v3226_v10, %v3226_v10  ;;  %v243_v19 = vmul.f32 %v3229_v11, %v3229_v11  ;;  %v3246_v20 = vld [vmem:[%s3189_s5 + $0x58] sm:$0xff]  ;;  %p2908_p11 = scmp.ne.s32.totalorder %s3462_s24, %s2907_s7  ;;  %p3527_p0 = scmp.ne.s32.totalorder %s3522_s10, 0 }
  0x6f   : > { %2394 = vmatprep.subr.bf16.mxu0 %v2725_v12  ;;  %v3236_v16 = vld [vmem:[%s3189_s5 + $0x48] sm:$0xff]  ;;  %v3239_v17 = vld [vmem:[%s3189_s5 + $0x40] sm:$0xff]  ;;  %v3249_v21 = vld [vmem:[%s3189_s5 + $0x50] sm:$0xff]  ;;  %v248_v27 = vmul.f32 %v3246_v20, %v3246_v20  ;;  %s2988_s8 = smov [#allocation8]  }
  0x70   : > { %2395 = vmatpush3.bf16.msra.mxu0 %v2725_v12  ;;  %v246_v22 = vmul.f32 %v3236_v16, %v3236_v16  ;;  %v245_v23 = vmul.f32 %v3239_v17, %v3239_v17  ;;  %v2727_v24 = vld [vmem:[#allocation5 + $0x10] sm:$0xff]   ;;  %v3256_v25 = vld [vmem:[%s3189_s5 + $0x68] sm:$0xff]  ;;  %v3259_v26 = vld [vmem:[%s3189_s5 + $0x60] sm:$0xff]  ;;  %v247_v28 = vmul.f32 %v3249_v21, %v3249_v21  ;;  %p2909_p1 = pnand %p2908_p11, %p3527_p0  ;;  %s2911_s23 = sshll.u32 %s2988_s8, 4  ;;  %s2912_s23 = int_to_ptr.vmem [resolvable:$false] %s2911_s23 }
  0x71   : > { %2396 = vmatprep.subr.bf16.mxu0 %v2726_v15  ;;  %v2728_v29 = vld [vmem:[#allocation5 + $0x18] sm:$0xff]   ;;  %v3269_v31 = vld [vmem:[%s3189_s5 + $0x70] sm:$0xff]  ;;  %v250_v32 = vmul.f32 %v3256_v25, %v3256_v25  ;;  %v249_v33 = vmul.f32 %v3259_v26, %v3259_v26  ;;  %v2729_v34 = vld [vmem:[#allocation5 + $0x20] sm:$0xff]   ;;  %s2913_s11 = scalar_lea.vmem %s2912_s23, 4096  ;;  %p2914_p5 = scmp.lt.s32.totalorder %s3462_s24, %s2912_s23 }
  0x72   : > { %259 = vadd.xlane.f32.xlu1 %v240_v6  ;;  %255 = vadd.xlane.f32.xlu0 %v238_v7  ;;  %v3266_v30 = vld [vmem:[%s3189_s5 + $0x78] sm:$0xff]  ;;  %v251_v36 = vmul.f32 %v3269_v31, %v3269_v31  ;;  %v2730_v37 = vld [vmem:[#allocation5 + $0x28] sm:$0xff]   ;;  %v2731_v38 = vld [vmem:[#allocation5 + $0x30] sm:$0xff]   ;;  %p2910_p3 = pneg %p2909_p1  ;;  %p2915_p9 = scmp.lt.s32.totalorder %s2913_s11, %s2907_s7 }
  0x73   : > { %v252_v35 = vmul.f32 %v3266_v30, %v3266_v30  ;;  %v2732_v39 = vld [vmem:[#allocation5 + $0x38] sm:$0xff]   ;;  %v2733_v40 = vld [vmem:[#allocation5 + $0x40] sm:$0xff]   ;;  %v2734_v41 = vld [vmem:[#allocation5 + $0x48] sm:$0xff]  }
  0x74   : > { %2397 = vmatpush3.bf16.msra.mxu0 %v2726_v15  ;;  %2426 = vmatprep.subr.bf16.mxu1 %v2733_v40  ;;  %v2735_v42 = vld [vmem:[#allocation5 + $0x50] sm:$0xff]   ;;  %v2736_v43 = vld [vmem:[#allocation5 + $0x58] sm:$0xff]   ;;  %v2737_v44 = vld [vmem:[#allocation5 + $0x60] sm:$0xff]   ;;  %p2916_p12 = por %p2915_p9, %p2914_p5 }
  0x75   : > { %2398 = vmatprep.subr.bf16.mxu0 %v2727_v24  ;;  %2427 = vmatpush3.bf16.msra.mxu1 %v2733_v40 }
  0x76   : > { %263 = vadd.xlane.f32.xlu1 %v242_v13  ;;  %261 = vadd.xlane.f32.xlu0 %v241_v14  ;;  %p2917_p2 = pnand %p2916_p12, %p2910_p3 }
  0x77   : > { %2428 = vmatprep.subr.bf16.mxu1 %v2734_v41 }
  0x78   : > { %2399 = vmatpush3.bf16.msra.mxu0 %v2727_v24 }
  0x79   : > { %2400 = vmatprep.subr.bf16.mxu0 %v2728_v29  ;;  %2429 = vmatpush3.bf16.msra.mxu1 %v2734_v41 }
  0x7a   : > { %267 = vadd.xlane.f32.xlu1 %v244_v18  ;;  %265 = vadd.xlane.f32.xlu0 %v243_v19 }
  0x7b   : > { %2430 = vmatprep.subr.bf16.mxu1 %v2735_v42 }
  0x7c   : > { %2401 = vmatpush3.bf16.msra.mxu0 %v2728_v29 }
  0x7d   : > { %2402 = vmatprep.subr.bf16.mxu0 %v2729_v34  ;;  %2431 = vmatpush3.bf16.msra.mxu1 %v2735_v42 }
  0x7e   : > { %271 = vadd.xlane.f32.xlu1 %v246_v22  ;;  %269 = vadd.xlane.f32.xlu0 %v245_v23 }
  0x7f   : > { %2432 = vmatprep.subr.bf16.mxu1 %v2736_v43 }
  0x80   : > { %2403 = vmatpush3.bf16.msra.mxu0 %v2729_v34 }
  0x81   : > { %2404 = vmatprep.subr.bf16.mxu0 %v2730_v37  ;;  %2433 = vmatpush3.bf16.msra.mxu1 %v2736_v43 }
  0x82   : > { %275 = vadd.xlane.f32.xlu1 %v248_v27  ;;  %273 = vadd.xlane.f32.xlu0 %v247_v28 }
  0x83   : > { %2434 = vmatprep.subr.bf16.mxu1 %v2737_v44 }
  0x84   : > { %2405 = vmatpush3.bf16.msra.mxu0 %v2730_v37 }
  0x85   : > { %2406 = vmatprep.subr.bf16.mxu0 %v2731_v38  ;;  %2435 = vmatpush3.bf16.msra.mxu1 %v2737_v44 }
  0x86   : > { %279 = vadd.xlane.f32.xlu1 %v250_v32  ;;  %277 = vadd.xlane.f32.xlu0 %v249_v33 }
  0x88   : > { %2407 = vmatpush3.bf16.msra.mxu0 %v2731_v38 }
  0x89   : > { %2408 = vmatprep.subr.bf16.mxu0 %v2732_v39 }
  0x8a   : > { %283 = vadd.xlane.f32.xlu1 %v252_v35  ;;  %281 = vadd.xlane.f32.xlu0 %v251_v36 }
  0x8c   : > { %2409 = vmatpush3.bf16.msra.mxu0 %v2732_v39 }
  0xfb   : > { %v258_v45 = vpop.xlane.xlu1 %257  ;;  %v254_v46 = vpop.xlane.xlu0 %253 }
  0xfc   : > { %v288_v47 = vmul.f32 0.0078125, %v258_v45  ;;  %v286_v48 = vmul.f32 0.0078125, %v254_v46 }
  0xfe   : > { %v304_v49 = vadd.f32 1e-08, %v288_v47  ;;  %v302_v50 = vadd.f32 1e-08, %v286_v48 }
  0xff   : > { %v260_v51 = vpop.xlane.xlu1 %259  ;;  %v256_v52 = vpop.xlane.xlu0 %255 }
 0x100   : > { %v289_v53 = vmul.f32 0.0078125, %v260_v51  ;;  %v287_v54 = vmul.f32 0.0078125, %v256_v52  ;;  %2789 = vrsqrt.f32 %v304_v49 }
 0x101   : > { %2791 = vrsqrt.f32 %v302_v50 }
 0x102   : > { %v305_v55 = vadd.f32 1e-08, %v289_v53  ;;  %v303_v56 = vadd.f32 1e-08, %v287_v54 }
 0x103   : > { %v264_v57 = vpop.xlane.xlu1 %263  ;;  %v262_v58 = vpop.xlane.xlu0 %261 }
 0x104   : > { %2793 = vrsqrt.f32 %v305_v55  ;;  %v291_v59 = vmul.f32 0.0078125, %v264_v57  ;;  %v290_v60 = vmul.f32 0.0078125, %v262_v58 }
 0x105   : > { %2795 = vrsqrt.f32 %v303_v56 }
 0x106   : > { %v307_v61 = vadd.f32 1e-08, %v291_v59  ;;  %v306_v62 = vadd.f32 1e-08, %v290_v60 }
 0x107   : > { %v268_v63 = vpop.xlane.xlu1 %267  ;;  %v266_v3 = vpop.xlane.xlu0 %265 }
 0x108   : > { %2797 = vrsqrt.f32 %v307_v61  ;;  %v293_v4 = vmul.f32 0.0078125, %v268_v63  ;;  %v292_v6 = vmul.f32 0.0078125, %v266_v3 }
 0x109   : > { %2799 = vrsqrt.f32 %v306_v62 }
 0x10a   : > { %v309_v7 = vadd.f32 1e-08, %v293_v4  ;;  %v308_v12 = vadd.f32 1e-08, %v292_v6  ;;  %v2790_v13 = vpop.eup %2789 }
 0x10b   : > { %v272_v14 = vpop.xlane.xlu1 %271  ;;  %v270_v15 = vpop.xlane.xlu0 %269  ;;  %v336_v34 = vmul.f32 %v2790_v13, %v3200_v0 }
 0x10c   : > { %v2792_v18 = vpop.eup %2791  ;;  %2801 = vrsqrt.f32 %v309_v7  ;;  %v295_v19 = vmul.f32 0.0078125, %v272_v14  ;;  %v294_v22 = vmul.f32 0.0078125, %v270_v15 }
 0x10d   : > { %2803 = vrsqrt.f32 %v308_v12  ;;  %v334_v33 = vmul.f32 %v2792_v18, %v3203_v1 }
 0x10e   : > { %v2794_v23 = vpop.eup %2793  ;;  %v311_v24 = vadd.f32 1e-08, %v295_v19  ;;  %v310_v27 = vadd.f32 1e-08, %v294_v22  ;;  %v2738_v22 = vld [vmem:[#allocation5 + $0x68] sm:$0xff]  }
 0x10f   : > { %v2796_v28 = vpop.eup %2795  ;;  %v276_v29 = vpop.xlane.xlu1 %275  ;;  %v337_v35 = vmul.f32 %v2794_v23, %v3206_v2  ;;  %2436 = vmatprep.subr.bf16.mxu1 %v2738_v22  ;;  %v2742_v23 = vld [vmem:[#allocation5 + $0x88] sm:$0xff]  }
 0x110   : > { %v274_v32 = vpop.xlane.xlu0 %273  ;;  %2805 = vrsqrt.f32 %v311_v24  ;;  %v297_v36 = vmul.f32 0.0078125, %v276_v29  ;;  %v335_v38 = vmul.f32 %v2796_v28, %v3213_v5  ;;  %2437 = vmatpush3.bf16.msra.mxu1 %v2738_v22  ;;  %v2745_v24 = vld [vmem:[#allocation5 + $0xa0] sm:$0xff]  }
 0x111   : > { %v296_v37 = vmul.f32 0.0078125, %v274_v32  ;;  %2807 = vrsqrt.f32 %v310_v27  ;;  %v351_v39 = vpack.c.bf16 %v337_v35, %v336_v34  ;;  %v3295_v27 = vld [vmem:[#allocation7] ss:$0 sm:$0xff] }
 0x112   : > { %v2798_v40 = vpop.eup %2797  ;;  %v313_v41 = vadd.f32 1e-08, %v297_v36  ;;  %v350_v43 = vpack.c.bf16 %v335_v38, %v334_v33 }
 0x113   : > { %v312_v42 = vadd.f32 1e-08, %v296_v37  ;;  %v2800_v44 = vpop.eup %2799  ;;  %v280_v45 = vpop.xlane.xlu1 %279  ;;  %v339_v1 = vmul.f32 %v2798_v40, %v3220_v8 }
 0x114   : > { %v278_v46 = vpop.xlane.xlu0 %277  ;;  %2809 = vrsqrt.f32 %v313_v41  ;;  %2410 = vmatprep.mubr.bf16.mxu0 %v350_v43  ;;  %v299_v0 = vmul.f32 0.0078125, %v280_v45  ;;  %v338_v47 = vmul.f32 %v2800_v44, %v3223_v9 }
 0x115   : > { %v298_v2 = vmul.f32 0.0078125, %v278_v46  ;;  %2811 = vrsqrt.f32 %v312_v42  ;;  %2411 = vmatmul.mubr.bf16.vlgmr.msra.gmra.mrb[0].mxu0 %v351_v39 }
 0x116   : > { %v2802_v5 = vpop.eup %2801  ;;  %v315_v48 = vadd.f32 1e-08, %v299_v0  ;;  %v352_v50 = vpack.c.bf16 %v339_v1, %v338_v47 }
 0x117   : > { %v314_v49 = vadd.f32 1e-08, %v298_v2  ;;  %v2804_v51 = vpop.eup %2803  ;;  %v284_v52 = vpop.xlane.xlu1 %283  ;;  %v341_v54 = vmul.f32 %v2802_v5, %v3226_v10 }
 0x118   : > { %v282_v53 = vpop.xlane.xlu0 %281  ;;  %2813 = vrsqrt.f32 %v315_v48  ;;  %v301_v55 = vmul.f32 0.0078125, %v284_v52  ;;  %2414 = vmatprep.mubr.bf16.mxu0 %v352_v50  ;;  %v340_v56 = vmul.f32 %v2804_v51, %v3229_v11 }
 0x119   : > { %v300_v8 = vmul.f32 0.0078125, %v282_v53  ;;  %2815 = vrsqrt.f32 %v314_v49 }
 0x11a   : > { %v2806_v57 = vpop.eup %2805  ;;  %v317_v9 = vadd.f32 1e-08, %v301_v55  ;;  %v353_v59 = vpack.c.bf16 %v341_v54, %v340_v56 }
 0x11b   : > { %v316_v58 = vadd.f32 1e-08, %v300_v8  ;;  %v2808_v60 = vpop.eup %2807  ;;  %v343_v61 = vmul.f32 %v2806_v57, %v3236_v16 }
 0x11c   : > { %2817 = vrsqrt.f32 %v317_v9  ;;  %v342_v62 = vmul.f32 %v2808_v60, %v3239_v17 }
 0x11d   : > { %2819 = vrsqrt.f32 %v316_v58  ;;  %2415 = vmatmul.mubr.bf16.gmra.mrb[4].mxu0 %v353_v59 }
 0x11e   : > { %v2810_v10 = vpop.eup %2809  ;;  %v354_v63 = vpack.c.bf16 %v343_v61, %v342_v62 }
 0x11f   : > { %v2812_v3 = vpop.eup %2811  ;;  %v345_v4 = vmul.f32 %v2810_v10, %v3246_v20 }
 0x120   : > { %2418 = vmatprep.mubr.bf16.mxu0 %v354_v63  ;;  %v344_v11 = vmul.f32 %v2812_v3, %v3249_v21  ;;  %v2739_v21 = vld [vmem:[#allocation5 + $0x70] sm:$0xff]  }
 0x121   : > { %2438 = vmatprep.subr.bf16.mxu1 %v2739_v21 }
 0x122   : > { %v2814_v6 = vpop.eup %2813  ;;  %v355_v7 = vpack.c.bf16 %v345_v4, %v344_v11  ;;  %2439 = vmatpush3.bf16.msra.mxu1 %v2739_v21 }
 0x123   : > { %v2816_v12 = vpop.eup %2815  ;;  %v347_v13 = vmul.f32 %v2814_v6, %v3256_v25  ;;  %v2740_v25 = vld [vmem:[#allocation5 + $0x78] sm:$0xff]  }
 0x124   : > { %v346_v16 = vmul.f32 %v2816_v12, %v3259_v26  ;;  %2440 = vmatprep.subr.bf16.mxu1 %v2740_v25  ;;  %v2741_v26 = vld [vmem:[#allocation5 + $0x80] sm:$0xff]  }
 0x125   : > { %2419 = vmatmul.mubr.bf16.gmra.mrb[8].mxu0 %v355_v7  ;;  %2458 = vmatprep.subr.bf16.mxu0 %v2741_v26 }
 0x126   : > { %v2818_v14 = vpop.eup %2817  ;;  %v356_v17 = vpack.c.bf16 %v347_v13, %v346_v16  ;;  %2441 = vmatpush3.bf16.msra.mxu1 %v2740_v25  ;;  %2459 = vmatpush3.bf16.msra.mxu0 %v2741_v26 }
 0x127   : > { %v2820_v15 = vpop.eup %2819  ;;  %v349_v18 = vmul.f32 %v2818_v14, %v3266_v30  ;;  %2460 = vmatprep.subr.bf16.mxu0 %v2742_v23  ;;  %v2743_v30 = vld [vmem:[#allocation5 + $0x90] sm:$0xff]  }
 0x128   : > { %2422 = vmatprep.mubr.bf16.mxu0 %v356_v17  ;;  %v348_v19 = vmul.f32 %v2820_v15, %v3269_v31  ;;  %v2744_v31 = vld [vmem:[#allocation5 + $0x98] sm:$0xff]  }
 0x12a   : > { %v357_v20 = vpack.c.bf16 %v349_v18, %v348_v19  ;;  %2461 = vmatpush3.bf16.msra.mxu0 %v2742_v23 }
 0x12b   : > { %2462 = vmatprep.subr.bf16.mxu0 %v2743_v30 }
 0x12d   : > { %2423 = vmatmul.mubr.bf16.gmra.mrb[12].mxu0 %v357_v20 }
 0x12e   : > { %2463 = vmatpush3.bf16.msra.mxu0 %v2743_v30 }
 0x12f   : > { %2464 = vmatprep.subr.bf16.mxu0 %v2744_v31 }
 0x132   : > { %2465 = vmatpush3.bf16.msra.mxu0 %v2744_v31 }
 0x133   : > { %2466 = vmatprep.subr.bf16.mxu0 %v2745_v24 }
 0x136   : > { %2467 = vmatpush3.bf16.msra.mxu0 %v2745_v24 }
 0x1e8   : > { %v2412_v28 = vpop.f32.mrb[0].mxu0 }
 0x1e9   : > { %v472_v29 = vadd.f32 %v2412_v28, %v3295_v27  ;;  %v463_v32 = vpop.f32.mrb[1].mxu0 }
 0x1ea   : > { %v464_v33 = vadd.f32 %v3295_v27, %v463_v32  ;;  %v2413_v34 = vpop.f32.mrb[2].mxu0 }
 0x1eb   : > { %v528_v35 = vmul.f32 0.2, %v472_v29  ;;  %v475_v36 = vadd.f32 %v2413_v34, %v3295_v27  ;;  %v466_v37 = vpop.f32.mrb[3].mxu0 }
 0x1ec   : > { %v526_v38 = vmul.f32 0.2, %v464_v33  ;;  %v467_v39 = vadd.f32 %v3295_v27, %v466_v37 }
 0x1ed   : > { %v529_v40 = vmul.f32 0.2, %v475_v36  ;;  %v544_v42 = vmax.f32 %v472_v29, %v528_v35 }
 0x1ee   : > { %v527_v41 = vmul.f32 0.2, %v467_v39  ;;  %v542_v45 = vmax.f32 %v464_v33, %v526_v38 }
 0x1ef   : > { %v545_v43 = vmax.f32 %v475_v36, %v529_v40  ;;  %v2747_v40 = vld [vmem:[#allocation5 + $0xb0] sm:$0xff]  }
 0x1f0   : > { %v2416_v44 = vpop.f32.mrb[4].mxu0  ;;  %v543_v46 = vmax.f32 %v467_v39, %v527_v41  ;;  %v2746_v39 = vld [vmem:[#allocation5 + $0xa8] sm:$0xff]   ;;  %v2748_v41 = vld [vmem:[#allocation5 + $0xb8] sm:$0xff]  }
 0x1f1   : > { %v488_v1 = vadd.f32 %v2416_v44, %v3295_v27  ;;  %v479_v0 = vpop.f32.mrb[5].mxu0  ;;  %v559_v2 = vpack.c.bf16 %v545_v43, %v544_v42  ;;  %2468 = vmatprep.subr.bf16.mxu0 %v2746_v39  ;;  %v2750_v42 = vld [vmem:[#allocation5 + $0xc8] sm:$0xff]   ;;  %v2751_v43 = vld [vmem:[#allocation5 + $0xd0] sm:$0xff]   ;;  %v2752_v44 = vld [vmem:[#allocation5 + $0xd8] sm:$0xff]  }
 0x1f2   : > { %v480_v47 = vadd.f32 %v3295_v27, %v479_v0  ;;  %v2417_v5 = vpop.f32.mrb[6].mxu0  ;;  %v558_v48 = vpack.c.bf16 %v543_v46, %v542_v45  ;;  %2469 = vmatpush3.bf16.msra.mxu0 %v2746_v39  ;;  %v2753_v45 = vld [vmem:[#allocation5 + $0xe0] sm:$0xff]  }
 0x1f3   : > { %v532_v49 = vmul.f32 0.2, %v488_v1  ;;  %v491_v50 = vadd.f32 %v2417_v5, %v3295_v27  ;;  %v482_v51 = vpop.f32.mrb[7].mxu0  ;;  %2470 = vmatprep.subr.bf16.mxu0 %v2747_v40  ;;  %v3313_v46 = vld [vmem:[#allocation7 + $0x1] ss:$0 sm:$0xff] }
 0x1f4   : > { %v530_v52 = vmul.f32 0.2, %v480_v47  ;;  %v483_v53 = vadd.f32 %v3295_v27, %v482_v51  ;;  %2442 = vmatprep.mubr.bf16.mxu1 %v558_v48 }
 0x1f5   : > { %v533_v54 = vmul.f32 0.2, %v491_v50  ;;  %2443 = vmatmul.mubr.bf16.vlgmr.msra.gmra.mrb[0].mxu1 %v559_v2  ;;  %v548_v8 = vmax.f32 %v488_v1, %v532_v49 }
 0x1f6   : > { %v531_v55 = vmul.f32 0.2, %v483_v53  ;;  %v546_v57 = vmax.f32 %v480_v47, %v530_v52  ;;  %2471 = vmatpush3.bf16.msra.mxu0 %v2747_v40 }
 0x1f7   : > { %v549_v56 = vmax.f32 %v491_v50, %v533_v54  ;;  %2472 = vmatprep.subr.bf16.mxu0 %v2748_v41 }
 0x1f8   : > { %v547_v9 = vmax.f32 %v483_v53, %v531_v55  ;;  %v2420_v58 = vpop.f32.mrb[8].mxu0 }
 0x1f9   : > { %v504_v59 = vadd.f32 %v2420_v58, %v3295_v27  ;;  %v495_v60 = vpop.f32.mrb[9].mxu0  ;;  %v561_v61 = vpack.c.bf16 %v549_v56, %v548_v8 }
 0x1fa   : > { %v496_v62 = vadd.f32 %v3295_v27, %v495_v60  ;;  %v2421_v10 = vpop.f32.mrb[10].mxu0  ;;  %v560_v63 = vpack.c.bf16 %v547_v9, %v546_v57  ;;  %2473 = vmatpush3.bf16.msra.mxu0 %v2748_v41 }
 0x1fb   : > { %v536_v3 = vmul.f32 0.2, %v504_v59  ;;  %v507_v4 = vadd.f32 %v2421_v10, %v3295_v27  ;;  %v498_v11 = vpop.f32.mrb[11].mxu0 }
 0x1fc   : > { %v534_v6 = vmul.f32 0.2, %v496_v62  ;;  %v499_v7 = vadd.f32 %v3295_v27, %v498_v11  ;;  %2446 = vmatprep.mubr.bf16.mxu1 %v560_v63 }
 0x1fd   : > { %v537_v12 = vmul.f32 0.2, %v507_v4  ;;  %2447 = vmatmul.mubr.bf16.gmra.mrb[4].mxu1 %v561_v61  ;;  %v552_v16 = vmax.f32 %v504_v59, %v536_v3 }
 0x1fe   : > { %v535_v13 = vmul.f32 0.2, %v499_v7  ;;  %v550_v17 = vmax.f32 %v496_v62, %v534_v6 }
 0x1ff   : > { %v553_v14 = vmax.f32 %v507_v4, %v537_v12 }
 0x200   : > { %v551_v15 = vmax.f32 %v499_v7, %v535_v13  ;;  %v2424_v18 = vpop.f32.mrb[12].mxu0 }
 0x201   : > { %v520_v19 = vadd.f32 %v2424_v18, %v3295_v27  ;;  %v511_v20 = vpop.f32.mrb[13].mxu0  ;;  %v563_v22 = vpack.c.bf16 %v553_v14, %v552_v16 }
 0x202   : > { %v512_v21 = vadd.f32 %v3295_v27, %v511_v20  ;;  %v2425_v25 = vpop.f32.mrb[14].mxu0  ;;  %v562_v26 = vpack.c.bf16 %v551_v15, %v550_v17 }
 0x203   : > { %v540_v23 = vmul.f32 0.2, %v520_v19  ;;  %v523_v30 = vadd.f32 %v2425_v25, %v3295_v27  ;;  %v514_v31 = vpop.f32.mrb[15].mxu0 }
 0x204   : > { %v538_v24 = vmul.f32 0.2, %v512_v21  ;;  %v515_v28 = vadd.f32 %v3295_v27, %v514_v31  ;;  %2450 = vmatprep.mubr.bf16.mxu1 %v562_v26  ;;  %v2749_v27 = vld [vmem:[#allocation5 + $0xc0] sm:$0xff]  }
 0x205   : > { %v541_v29 = vmul.f32 0.2, %v523_v30  ;;  %2451 = vmatmul.mubr.bf16.gmra.mrb[8].mxu1 %v563_v22  ;;  %v556_v33 = vmax.f32 %v520_v19, %v540_v23  ;;  %2490 = vmatprep.subr.bf16.mxu1 %v2749_v27 }
 0x206   : > { %v539_v32 = vmul.f32 0.2, %v515_v28  ;;  %v554_v35 = vmax.f32 %v512_v21, %v538_v24  ;;  %2491 = vmatpush3.bf16.msra.mxu1 %v2749_v27 }
 0x207   : > { %v557_v34 = vmax.f32 %v523_v30, %v541_v29  ;;  %2492 = vmatprep.subr.bf16.mxu1 %v2750_v42 }
 0x208   : > { %v555_v36 = vmax.f32 %v515_v28, %v539_v32 }
 0x209   : > { %v565_v37 = vpack.c.bf16 %v557_v34, %v556_v33 }
 0x20a   : > { %v564_v38 = vpack.c.bf16 %v555_v36, %v554_v35  ;;  %2493 = vmatpush3.bf16.msra.mxu1 %v2750_v42 }
 0x20b   : > { %2494 = vmatprep.subr.bf16.mxu1 %v2751_v43 }
 0x20c   : > { %2454 = vmatprep.mubr.bf16.mxu1 %v564_v38 }
 0x20d   : > { %2455 = vmatmul.mubr.bf16.gmra.mrb[12].mxu1 %v565_v37 }
 0x20e   : > { %2495 = vmatpush3.bf16.msra.mxu1 %v2751_v43 }
 0x20f   : > { %2496 = vmatprep.subr.bf16.mxu1 %v2752_v44 }
 0x212   : > { %2497 = vmatpush3.bf16.msra.mxu1 %v2752_v44 }
 0x213   : > { %2498 = vmatprep.subr.bf16.mxu1 %v2753_v45 }
 0x216   : > { %2499 = vmatpush3.bf16.msra.mxu1 %v2753_v45 }
 0x2c8   : > { %v2444_v1 = vpop.f32.mrb[0].mxu1 }
 0x2c9   : > { %v682_v0 = vadd.f32 %v2444_v1, %v3313_v46  ;;  %v673_v2 = vpop.f32.mrb[1].mxu1 }
 0x2ca   : > { %v674_v47 = vadd.f32 %v3313_v46, %v673_v2  ;;  %v2445_v5 = vpop.f32.mrb[2].mxu1 }
 0x2cb   : > { %v738_v48 = vmul.f32 0.2, %v682_v0  ;;  %v685_v49 = vadd.f32 %v2445_v5, %v3313_v46  ;;  %v676_v50 = vpop.f32.mrb[3].mxu1 }
 0x2cc   : > { %v736_v51 = vmul.f32 0.2, %v674_v47  ;;  %v677_v52 = vadd.f32 %v3313_v46, %v676_v50 }
 0x2cd   : > { %v739_v53 = vmul.f32 0.2, %v685_v49  ;;  %v754_v55 = vmax.f32 %v682_v0, %v738_v48 }
 0x2ce   : > { %v737_v54 = vmul.f32 0.2, %v677_v52  ;;  %v752_v56 = vmax.f32 %v674_v47, %v736_v51 }
 0x2cf   : > { %v755_v8 = vmax.f32 %v685_v49, %v739_v53  ;;  %v2755_v53 = vld [vmem:[#allocation5 + $0xf0] sm:$0xff]  }
 0x2d0   : > { %v753_v57 = vmax.f32 %v677_v52, %v737_v54  ;;  %v2448_v9 = vpop.f32.mrb[4].mxu1  ;;  %v2754_v52 = vld [vmem:[#allocation5 + $0xe8] sm:$0xff]   ;;  %v2756_v54 = vld [vmem:[#allocation5 + $0xf8] sm:$0xff]  }
 0x2d1   : > { %v769_v58 = vpack.c.bf16 %v755_v8, %v754_v55  ;;  %v698_v59 = vadd.f32 %v2448_v9, %v3313_v46  ;;  %v689_v60 = vpop.f32.mrb[5].mxu1  ;;  %2500 = vmatprep.subr.bf16.mxu1 %v2754_v52  ;;  %v2758_v55 = vld [vmem:[#allocation5 + $0x108] sm:$0xff]   ;;  %v2759_v8 = vld [vmem:[#allocation5 + $0x110] sm:$0xff]   ;;  %v3331_v9 = vld [vmem:[#allocation7 + $0x2] ss:$0 sm:$0xff] }
 0x2d2   : > { %v690_v61 = vadd.f32 %v3313_v46, %v689_v60  ;;  %v2449_v62 = vpop.f32.mrb[6].mxu1  ;;  %v768_v10 = vpack.c.bf16 %v753_v57, %v752_v56  ;;  %2501 = vmatpush3.bf16.msra.mxu1 %v2754_v52  ;;  %v2760_v56 = vld [vmem:[#allocation5 + $0x118] sm:$0xff]   ;;  %v2761_v57 = vld [vmem:[#allocation5 + $0x120] sm:$0xff]  }
 0x2d3   : > { %v742_v63 = vmul.f32 0.2, %v698_v59  ;;  %v701_v3 = vadd.f32 %v2449_v62, %v3313_v46  ;;  %v692_v4 = vpop.f32.mrb[7].mxu1  ;;  %2502 = vmatprep.subr.bf16.mxu1 %v2755_v53 }
 0x2d4   : > { %v740_v11 = vmul.f32 0.2, %v690_v61  ;;  %v693_v6 = vadd.f32 %v3313_v46, %v692_v4  ;;  %2474 = vmatprep.mubr.bf16.mxu0 %v768_v10 }
 0x2d5   : > { %v743_v7 = vmul.f32 0.2, %v701_v3  ;;  %2475 = vmatmul.mubr.bf16.vlgmr.msra.gmra.mrb[16].mxu0 %v769_v58  ;;  %v758_v13 = vmax.f32 %v698_v59, %v742_v63 }
 0x2d6   : > { %v741_v12 = vmul.f32 0.2, %v693_v6  ;;  %v756_v14 = vmax.f32 %v690_v61, %v740_v11  ;;  %2503 = vmatpush3.bf16.msra.mxu1 %v2755_v53 }
 0x2d7   : > { %v759_v16 = vmax.f32 %v701_v3, %v743_v7  ;;  %2504 = vmatprep.subr.bf16.mxu1 %v2756_v54 }
 0x2d8   : > { %v757_v17 = vmax.f32 %v693_v6, %v741_v12  ;;  %v2452_v15 = vpop.f32.mrb[8].mxu1 }
 0x2d9   : > { %v714_v18 = vadd.f32 %v2452_v15, %v3313_v46  ;;  %v705_v19 = vpop.f32.mrb[9].mxu1  ;;  %v771_v20 = vpack.c.bf16 %v759_v16, %v758_v13 }
 0x2da   : > { %v706_v22 = vadd.f32 %v3313_v46, %v705_v19  ;;  %v2453_v21 = vpop.f32.mrb[10].mxu1  ;;  %v770_v25 = vpack.c.bf16 %v757_v17, %v756_v14  ;;  %2505 = vmatpush3.bf16.msra.mxu1 %v2756_v54 }
 0x2db   : > { %v746_v26 = vmul.f32 0.2, %v714_v18  ;;  %v717_v23 = vadd.f32 %v2453_v21, %v3313_v46  ;;  %v708_v30 = vpop.f32.mrb[11].mxu1 }
 0x2dc   : > { %v744_v31 = vmul.f32 0.2, %v706_v22  ;;  %v709_v24 = vadd.f32 %v3313_v46, %v708_v30  ;;  %2478 = vmatprep.mubr.bf16.mxu0 %v770_v25 }
 0x2dd   : > { %v747_v28 = vmul.f32 0.2, %v717_v23  ;;  %2479 = vmatmul.mubr.bf16.gmra.mrb[20].mxu0 %v771_v20  ;;  %v762_v32 = vmax.f32 %v714_v18, %v746_v26 }
 0x2de   : > { %v745_v29 = vmul.f32 0.2, %v709_v24  ;;  %v760_v34 = vmax.f32 %v706_v22, %v744_v31 }
 0x2df   : > { %v763_v33 = vmax.f32 %v717_v23, %v747_v28 }
 0x2e0   : > { %v761_v35 = vmax.f32 %v709_v24, %v745_v29  ;;  %v2456_v36 = vpop.f32.mrb[12].mxu1 }
 0x2e1   : > { %v730_v37 = vadd.f32 %v2456_v36, %v3313_v46  ;;  %v721_v38 = vpop.f32.mrb[13].mxu1  ;;  %v773_v39 = vpack.c.bf16 %v763_v33, %v762_v32 }
 0x2e2   : > { %v722_v40 = vadd.f32 %v3313_v46, %v721_v38  ;;  %v2457_v41 = vpop.f32.mrb[14].mxu1  ;;  %v772_v27 = vpack.c.bf16 %v761_v35, %v760_v34 }
 0x2e3   : > { %v750_v42 = vmul.f32 0.2, %v730_v37  ;;  %v733_v43 = vadd.f32 %v2457_v41, %v3313_v46  ;;  %v724_v44 = vpop.f32.mrb[15].mxu1 }
 0x2e4   : > { %v748_v45 = vmul.f32 0.2, %v722_v40  ;;  %v725_v1 = vadd.f32 %v3313_v46, %v724_v44  ;;  %2482 = vmatprep.mubr.bf16.mxu0 %v772_v27  ;;  %v2757_v46 = vld [vmem:[#allocation5 + $0x100] sm:$0xff]  }
 0x2e5   : > { %v751_v0 = vmul.f32 0.2, %v733_v43  ;;  %2483 = vmatmul.mubr.bf16.gmra.mrb[24].mxu0 %v773_v39  ;;  %v766_v47 = vmax.f32 %v730_v37, %v750_v42  ;;  %2522 = vmatprep.subr.bf16.mxu0 %v2757_v46 }
 0x2e6   : > { %v749_v2 = vmul.f32 0.2, %v725_v1  ;;  %v764_v48 = vmax.f32 %v722_v40, %v748_v45  ;;  %2523 = vmatpush3.bf16.msra.mxu0 %v2757_v46 }
 0x2e7   : > { %v767_v5 = vmax.f32 %v733_v43, %v751_v0  ;;  %2524 = vmatprep.subr.bf16.mxu0 %v2758_v55 }
 0x2e8   : > { %v765_v49 = vmax.f32 %v725_v1, %v749_v2 }
 0x2e9   : > { %v775_v50 = vpack.c.bf16 %v767_v5, %v766_v47 }
 0x2ea   : > { %v774_v51 = vpack.c.bf16 %v765_v49, %v764_v48  ;;  %2525 = vmatpush3.bf16.msra.mxu0 %v2758_v55 }
 0x2eb   : > { %2526 = vmatprep.subr.bf16.mxu0 %v2759_v8 }
 0x2ec   : > { %2486 = vmatprep.mubr.bf16.mxu0 %v774_v51 }
 0x2ed   : > { %2487 = vmatmul.mubr.bf16.gmra.mrb[28].mxu0 %v775_v50 }
 0x2ee   : > { %2527 = vmatpush3.bf16.msra.mxu0 %v2759_v8 }
 0x2ef   : > { %2528 = vmatprep.subr.bf16.mxu0 %v2760_v56 }
 0x2f2   : > { %2529 = vmatpush3.bf16.msra.mxu0 %v2760_v56 }
 0x2f3   : > { %2530 = vmatprep.subr.bf16.mxu0 %v2761_v57 }
 0x2f6   : > { %2531 = vmatpush3.bf16.msra.mxu0 %v2761_v57 }
 0x3a8   : > { %v2476_v58 = vpop.f32.mrb[16].mxu0 }
 0x3a9   : > { %v892_v59 = vadd.f32 %v2476_v58, %v3331_v9  ;;  %v883_v60 = vpop.f32.mrb[17].mxu0 }
 0x3aa   : > { %v884_v61 = vadd.f32 %v3331_v9, %v883_v60  ;;  %v2477_v62 = vpop.f32.mrb[18].mxu0 }
 0x3ab   : > { %v948_v10 = vmul.f32 0.2, %v892_v59  ;;  %v895_v63 = vadd.f32 %v2477_v62, %v3331_v9  ;;  %v886_v3 = vpop.f32.mrb[19].mxu0 }
 0x3ac   : > { %v946_v4 = vmul.f32 0.2, %v884_v61  ;;  %v887_v11 = vadd.f32 %v3331_v9, %v886_v3 }
 0x3ad   : > { %v949_v6 = vmul.f32 0.2, %v895_v63  ;;  %v964_v12 = vmax.f32 %v892_v59, %v948_v10 }
 0x3ae   : > { %v947_v7 = vmul.f32 0.2, %v887_v11  ;;  %v962_v16 = vmax.f32 %v884_v61, %v946_v4 }
 0x3af   : > { %v965_v13 = vmax.f32 %v895_v63, %v949_v6  ;;  %v2763_v6 = vld [vmem:[#allocation5 + $0x130] sm:$0xff]  }
 0x3b0   : > { %v963_v14 = vmax.f32 %v887_v11, %v947_v7  ;;  %v2480_v17 = vpop.f32.mrb[20].mxu0  ;;  %v2762_v11 = vld [vmem:[#allocation5 + $0x128] sm:$0xff]   ;;  %v2764_v7 = vld [vmem:[#allocation5 + $0x138] sm:$0xff]  }
 0x3b1   : > { %v979_v15 = vpack.c.bf16 %v965_v13, %v964_v12  ;;  %v908_v18 = vadd.f32 %v2480_v17, %v3331_v9  ;;  %v899_v19 = vpop.f32.mrb[21].mxu0  ;;  %2532 = vmatprep.subr.bf16.mxu0 %v2762_v11  ;;  %v2766_v12 = vld [vmem:[#allocation5 + $0x148] sm:$0xff]   ;;  %v2767_v13 = vld [vmem:[#allocation5 + $0x150] sm:$0xff]   ;;  %v3349_v17 = vld [vmem:[#allocation7 + $0x3] ss:$0 sm:$0xff] }
 0x3b2   : > { %v900_v20 = vadd.f32 %v3331_v9, %v899_v19  ;;  %v2481_v22 = vpop.f32.mrb[22].mxu0  ;;  %v978_v21 = vpack.c.bf16 %v963_v14, %v962_v16  ;;  %2533 = vmatpush3.bf16.msra.mxu0 %v2762_v11  ;;  %v2768_v16 = vld [vmem:[#allocation5 + $0x158] sm:$0xff]   ;;  %v2769_v14 = vld [vmem:[#allocation5 + $0x160] sm:$0xff]  }
 0x3b3   : > { %v952_v25 = vmul.f32 0.2, %v908_v18  ;;  %v911_v26 = vadd.f32 %v2481_v22, %v3331_v9  ;;  %v902_v23 = vpop.f32.mrb[23].mxu0  ;;  %2534 = vmatprep.subr.bf16.mxu0 %v2763_v6 }
 0x3b4   : > { %v950_v30 = vmul.f32 0.2, %v900_v20  ;;  %v903_v31 = vadd.f32 %v3331_v9, %v902_v23  ;;  %2506 = vmatprep.mubr.bf16.mxu1 %v978_v21 }
 0x3b5   : > { %v953_v24 = vmul.f32 0.2, %v911_v26  ;;  %2507 = vmatmul.mubr.bf16.vlgmr.msra.gmra.mrb[16].mxu1 %v979_v15  ;;  %v968_v29 = vmax.f32 %v908_v18, %v952_v25 }
 0x3b6   : > { %v951_v28 = vmul.f32 0.2, %v903_v31  ;;  %v966_v33 = vmax.f32 %v900_v20, %v950_v30  ;;  %2535 = vmatpush3.bf16.msra.mxu0 %v2763_v6 }
 0x3b7   : > { %v969_v32 = vmax.f32 %v911_v26, %v953_v24  ;;  %2536 = vmatprep.subr.bf16.mxu0 %v2764_v7 }
 0x3b8   : > { %v967_v34 = vmax.f32 %v903_v31, %v951_v28  ;;  %v2484_v35 = vpop.f32.mrb[24].mxu0 }
 0x3b9   : > { %v924_v36 = vadd.f32 %v2484_v35, %v3331_v9  ;;  %v915_v37 = vpop.f32.mrb[25].mxu0  ;;  %v981_v38 = vpack.c.bf16 %v969_v32, %v968_v29 }
 0x3ba   : > { %v916_v39 = vadd.f32 %v3331_v9, %v915_v37  ;;  %v2485_v40 = vpop.f32.mrb[26].mxu0  ;;  %v980_v41 = vpack.c.bf16 %v967_v34, %v966_v33  ;;  %2537 = vmatpush3.bf16.msra.mxu0 %v2764_v7 }
 0x3bb   : > { %v956_v27 = vmul.f32 0.2, %v924_v36  ;;  %v927_v42 = vadd.f32 %v2485_v40, %v3331_v9  ;;  %v918_v43 = vpop.f32.mrb[27].mxu0 }
 0x3bc   : > { %v954_v44 = vmul.f32 0.2, %v916_v39  ;;  %v919_v45 = vadd.f32 %v3331_v9, %v918_v43  ;;  %2510 = vmatprep.mubr.bf16.mxu1 %v980_v41 }
 0x3bd   : > { %v957_v1 = vmul.f32 0.2, %v927_v42  ;;  %2511 = vmatmul.mubr.bf16.gmra.mrb[20].mxu1 %v981_v38  ;;  %v972_v2 = vmax.f32 %v924_v36, %v956_v27 }
 0x3be   : > { %v955_v0 = vmul.f32 0.2, %v919_v45  ;;  %v970_v5 = vmax.f32 %v916_v39, %v954_v44 }
 0x3bf   : > { %v973_v47 = vmax.f32 %v927_v42, %v957_v1 }
 0x3c0   : > { %v971_v48 = vmax.f32 %v919_v45, %v955_v0  ;;  %v2488_v49 = vpop.f32.mrb[28].mxu0 }
 0x3c1   : > { %v940_v50 = vadd.f32 %v2488_v49, %v3331_v9  ;;  %v931_v51 = vpop.f32.mrb[29].mxu0  ;;  %v983_v52 = vpack.c.bf16 %v973_v47, %v972_v2 }
 0x3c2   : > { %v932_v53 = vadd.f32 %v3331_v9, %v931_v51  ;;  %v2489_v54 = vpop.f32.mrb[30].mxu0  ;;  %v982_v46 = vpack.c.bf16 %v971_v48, %v970_v5 }
 0x3c3   : > { %v960_v55 = vmul.f32 0.2, %v940_v50  ;;  %v943_v8 = vadd.f32 %v2489_v54, %v3331_v9  ;;  %v934_v56 = vpop.f32.mrb[31].mxu0 }
 0x3c4   : > { %v958_v57 = vmul.f32 0.2, %v932_v53  ;;  %v935_v58 = vadd.f32 %v3331_v9, %v934_v56  ;;  %2514 = vmatprep.mubr.bf16.mxu1 %v982_v46  ;;  %v2765_v9 = vld [vmem:[#allocation5 + $0x140] sm:$0xff]  }
 0x3c5   : > { %v961_v59 = vmul.f32 0.2, %v943_v8  ;;  %2515 = vmatmul.mubr.bf16.gmra.mrb[24].mxu1 %v983_v52  ;;  %v976_v61 = vmax.f32 %v940_v50, %v960_v55  ;;  %2554 = vmatprep.subr.bf16.mxu1 %v2765_v9 }
 0x3c6   : > { %v959_v60 = vmul.f32 0.2, %v935_v58  ;;  %v974_v10 = vmax.f32 %v932_v53, %v958_v57  ;;  %2555 = vmatpush3.bf16.msra.mxu1 %v2765_v9 }
 0x3c7   : > { %v977_v62 = vmax.f32 %v943_v8, %v961_v59  ;;  %2556 = vmatprep.subr.bf16.mxu1 %v2766_v12 }
 0x3c8   : > { %v975_v63 = vmax.f32 %v935_v58, %v959_v60 }
 0x3c9   : > { %v985_v3 = vpack.c.bf16 %v977_v62, %v976_v61 }
 0x3ca   : > { %v984_v4 = vpack.c.bf16 %v975_v63, %v974_v10  ;;  %2557 = vmatpush3.bf16.msra.mxu1 %v2766_v12 }
 0x3cb   : > { %2558 = vmatprep.subr.bf16.mxu1 %v2767_v13 }
 0x3cc   : > { %2518 = vmatprep.mubr.bf16.mxu1 %v984_v4 }
 0x3cd   : > { %2519 = vmatmul.mubr.bf16.gmra.mrb[28].mxu1 %v985_v3 }
 0x3ce   : > { %2559 = vmatpush3.bf16.msra.mxu1 %v2767_v13 }
 0x3cf   : > { %2560 = vmatprep.subr.bf16.mxu1 %v2768_v16 }
 0x3d2   : > { %2561 = vmatpush3.bf16.msra.mxu1 %v2768_v16 }
 0x3d3   : > { %2562 = vmatprep.subr.bf16.mxu1 %v2769_v14 }
 0x3d6   : > { %2563 = vmatpush3.bf16.msra.mxu1 %v2769_v14 }
 0x488   : > { %v2508_v15 = vpop.f32.mrb[16].mxu1 }
 0x489   : > { %v1102_v18 = vadd.f32 %v2508_v15, %v3349_v17  ;;  %v1093_v19 = vpop.f32.mrb[17].mxu1 }
 0x48a   : > { %v1094_v20 = vadd.f32 %v3349_v17, %v1093_v19  ;;  %v2509_v22 = vpop.f32.mrb[18].mxu1 }
 0x48b   : > { %v1158_v21 = vmul.f32 0.2, %v1102_v18  ;;  %v1105_v25 = vadd.f32 %v2509_v22, %v3349_v17  ;;  %v1096_v26 = vpop.f32.mrb[19].mxu1 }
 0x48c   : > { %v1156_v23 = vmul.f32 0.2, %v1094_v20  ;;  %v1097_v30 = vadd.f32 %v3349_v17, %v1096_v26 }
 0x48d   : > { %v1159_v31 = vmul.f32 0.2, %v1105_v25  ;;  %v1174_v28 = vmax.f32 %v1102_v18, %v1158_v21 }
 0x48e   : > { %v1157_v24 = vmul.f32 0.2, %v1097_v30  ;;  %v1172_v32 = vmax.f32 %v1094_v20, %v1156_v23 }
 0x48f   : > { %v1175_v29 = vmax.f32 %v1105_v25, %v1159_v31  ;;  %v2771_v31 = vld [vmem:[#allocation5 + $0x170] sm:$0xff]  }
 0x490   : > { %v1173_v33 = vmax.f32 %v1097_v30, %v1157_v24  ;;  %v2512_v34 = vpop.f32.mrb[20].mxu1  ;;  %v2770_v30 = vld [vmem:[#allocation5 + $0x168] sm:$0xff]   ;;  %v2772_v24 = vld [vmem:[#allocation5 + $0x178] sm:$0xff]  }
 0x491   : > { %v1189_v35 = vpack.c.bf16 %v1175_v29, %v1174_v28  ;;  %v1118_v36 = vadd.f32 %v2512_v34, %v3349_v17  ;;  %v1109_v37 = vpop.f32.mrb[21].mxu1  ;;  %2564 = vmatprep.subr.bf16.mxu1 %v2770_v30  ;;  %v2774_v28 = vld [vmem:[#allocation5 + $0x188] sm:$0xff]   ;;  %v2775_v29 = vld [vmem:[#allocation5 + $0x190] sm:$0xff]   ;;  %v3367_v34 = vld [vmem:[#allocation7 + $0x4] ss:$0 sm:$0xff] }
 0x492   : > { %v1110_v38 = vadd.f32 %v3349_v17, %v1109_v37  ;;  %v2513_v39 = vpop.f32.mrb[22].mxu1  ;;  %v1188_v40 = vpack.c.bf16 %v1173_v33, %v1172_v32  ;;  %2565 = vmatpush3.bf16.msra.mxu1 %v2770_v30  ;;  %v2776_v32 = vld [vmem:[#allocation5 + $0x198] sm:$0xff]   ;;  %v2777_v33 = vld [vmem:[#allocation5 + $0x1a0] sm:$0xff]  }
 0x493   : > { %v1162_v41 = vmul.f32 0.2, %v1118_v36  ;;  %v1121_v27 = vadd.f32 %v2513_v39, %v3349_v17  ;;  %v1112_v42 = vpop.f32.mrb[23].mxu1  ;;  %2566 = vmatprep.subr.bf16.mxu1 %v2771_v31 }
 0x494   : > { %v1160_v43 = vmul.f32 0.2, %v1110_v38  ;;  %v1113_v44 = vadd.f32 %v3349_v17, %v1112_v42  ;;  %2538 = vmatprep.mubr.bf16.mxu0 %v1188_v40 }
 0x495   : > { %v1163_v45 = vmul.f32 0.2, %v1121_v27  ;;  %2539 = vmatmul.mubr.bf16.vlgmr.msra.gmra.mrb[32].mxu0 %v1189_v35  ;;  %v1178_v0 = vmax.f32 %v1118_v36, %v1162_v41 }
 0x496   : > { %v1161_v1 = vmul.f32 0.2, %v1113_v44  ;;  %v1176_v47 = vmax.f32 %v1110_v38, %v1160_v43  ;;  %2567 = vmatpush3.bf16.msra.mxu1 %v2771_v31 }
 0x497   : > { %v1179_v2 = vmax.f32 %v1121_v27, %v1163_v45  ;;  %2568 = vmatprep.subr.bf16.mxu1 %v2772_v24 }
 0x498   : > { %v1177_v5 = vmax.f32 %v1113_v44, %v1161_v1  ;;  %v2516_v48 = vpop.f32.mrb[24].mxu1 }
 0x499   : > { %v1134_v49 = vadd.f32 %v2516_v48, %v3349_v17  ;;  %v1125_v50 = vpop.f32.mrb[25].mxu1  ;;  %v1191_v51 = vpack.c.bf16 %v1179_v2, %v1178_v0 }
 0x49a   : > { %v1126_v52 = vadd.f32 %v3349_v17, %v1125_v50  ;;  %v2517_v53 = vpop.f32.mrb[26].mxu1  ;;  %v1190_v54 = vpack.c.bf16 %v1177_v5, %v1176_v47  ;;  %2569 = vmatpush3.bf16.msra.mxu1 %v2772_v24 }
 0x49b   : > { %v1166_v46 = vmul.f32 0.2, %v1134_v49  ;;  %v1137_v55 = vadd.f32 %v2517_v53, %v3349_v17  ;;  %v1128_v8 = vpop.f32.mrb[27].mxu1 }
 0x49c   : > { %v1164_v56 = vmul.f32 0.2, %v1126_v52  ;;  %v1129_v57 = vadd.f32 %v3349_v17, %v1128_v8  ;;  %2542 = vmatprep.mubr.bf16.mxu0 %v1190_v54 }
 0x49d   : > { %v1167_v58 = vmul.f32 0.2, %v1137_v55  ;;  %2543 = vmatmul.mubr.bf16.gmra.mrb[36].mxu0 %v1191_v51  ;;  %v1182_v60 = vmax.f32 %v1134_v49, %v1166_v46 }
 0x49e   : > { %v1165_v59 = vmul.f32 0.2, %v1129_v57  ;;  %v1180_v62 = vmax.f32 %v1126_v52, %v1164_v56 }
 0x49f   : > { %v1183_v61 = vmax.f32 %v1137_v55, %v1167_v58 }
 0x4a0   : > { %v1181_v10 = vmax.f32 %v1129_v57, %v1165_v59  ;;  %v2520_v63 = vpop.f32.mrb[28].mxu1 }
 0x4a1   : > { %v1150_v3 = vadd.f32 %v2520_v63, %v3349_v17  ;;  %v1141_v4 = vpop.f32.mrb[29].mxu1  ;;  %v1193_v11 = vpack.c.bf16 %v1183_v61, %v1182_v60 }
 0x4a2   : > { %v1142_v6 = vadd.f32 %v3349_v17, %v1141_v4  ;;  %v2521_v7 = vpop.f32.mrb[30].mxu1  ;;  %v1192_v9 = vpack.c.bf16 %v1181_v10, %v1180_v62 }
 0x4a3   : > { %v1170_v12 = vmul.f32 0.2, %v1150_v3  ;;  %v1153_v13 = vadd.f32 %v2521_v7, %v3349_v17  ;;  %v1144_v16 = vpop.f32.mrb[31].mxu1 }
 0x4a4   : > { %v1168_v14 = vmul.f32 0.2, %v1142_v6  ;;  %v1145_v15 = vadd.f32 %v3349_v17, %v1144_v16  ;;  %2546 = vmatprep.mubr.bf16.mxu0 %v1192_v9  ;;  %v2773_v17 = vld [vmem:[#allocation5 + $0x180] sm:$0xff]  }
 0x4a5   : > { %v1171_v18 = vmul.f32 0.2, %v1153_v13  ;;  %2547 = vmatmul.mubr.bf16.gmra.mrb[40].mxu0 %v1193_v11  ;;  %v1186_v20 = vmax.f32 %v1150_v3, %v1170_v12  ;;  %2586 = vmatprep.subr.bf16.mxu0 %v2773_v17 }
 0x4a6   : > { %v1169_v19 = vmul.f32 0.2, %v1145_v15  ;;  %v1184_v21 = vmax.f32 %v1142_v6, %v1168_v14  ;;  %2587 = vmatpush3.bf16.msra.mxu0 %v2773_v17 }
 0x4a7   : > { %v1187_v22 = vmax.f32 %v1153_v13, %v1171_v18  ;;  %2588 = vmatprep.subr.bf16.mxu0 %v2774_v28 }
 0x4a8   : > { %v1185_v25 = vmax.f32 %v1145_v15, %v1169_v19 }
 0x4a9   : > { %v1195_v26 = vpack.c.bf16 %v1187_v22, %v1186_v20 }
 0x4aa   : > { %v1194_v23 = vpack.c.bf16 %v1185_v25, %v1184_v21  ;;  %2589 = vmatpush3.bf16.msra.mxu0 %v2774_v28 }
 0x4ab   : > { %2590 = vmatprep.subr.bf16.mxu0 %v2775_v29 }
 0x4ac   : > { %2550 = vmatprep.mubr.bf16.mxu0 %v1194_v23 }
 0x4ad   : > { %2551 = vmatmul.mubr.bf16.gmra.mrb[44].mxu0 %v1195_v26 }
 0x4ae   : > { %2591 = vmatpush3.bf16.msra.mxu0 %v2775_v29 }
 0x4af   : > { %2592 = vmatprep.subr.bf16.mxu0 %v2776_v32 }
 0x4b2   : > { %2593 = vmatpush3.bf16.msra.mxu0 %v2776_v32 }
 0x4b3   : > { %2594 = vmatprep.subr.bf16.mxu0 %v2777_v33 }
 0x4b6   : > { %2595 = vmatpush3.bf16.msra.mxu0 %v2777_v33 }
 0x568   : > { %v2540_v35 = vpop.f32.mrb[32].mxu0 }
 0x569   : > { %v1312_v36 = vadd.f32 %v2540_v35, %v3367_v34  ;;  %v1303_v37 = vpop.f32.mrb[33].mxu0 }
 0x56a   : > { %v1304_v38 = vadd.f32 %v3367_v34, %v1303_v37  ;;  %v2541_v39 = vpop.f32.mrb[34].mxu0 }
 0x56b   : > { %v1368_v40 = vmul.f32 0.2, %v1312_v36  ;;  %v1315_v41 = vadd.f32 %v2541_v39, %v3367_v34  ;;  %v1306_v27 = vpop.f32.mrb[35].mxu0 }
 0x56c   : > { %v1366_v42 = vmul.f32 0.2, %v1304_v38  ;;  %v1307_v43 = vadd.f32 %v3367_v34, %v1306_v27 }
 0x56d   : > { %v1369_v44 = vmul.f32 0.2, %v1315_v41  ;;  %v1384_v1 = vmax.f32 %v1312_v36, %v1368_v40 }
 0x56e   : > { %v1367_v45 = vmul.f32 0.2, %v1307_v43  ;;  %v1382_v2 = vmax.f32 %v1304_v38, %v1366_v42 }
 0x56f   : > { %v1385_v0 = vmax.f32 %v1315_v41, %v1369_v44  ;;  %v2779_v44 = vld [vmem:[#allocation5 + $0x1b0] sm:$0xff]  }
 0x570   : > { %v1383_v47 = vmax.f32 %v1307_v43, %v1367_v45  ;;  %v2544_v5 = vpop.f32.mrb[36].mxu0  ;;  %v2778_v43 = vld [vmem:[#allocation5 + $0x1a8] sm:$0xff]   ;;  %v2780_v45 = vld [vmem:[#allocation5 + $0x1b8] sm:$0xff]  }
 0x571   : > { %v1399_v48 = vpack.c.bf16 %v1385_v0, %v1384_v1  ;;  %v1328_v49 = vadd.f32 %v2544_v5, %v3367_v34  ;;  %v1319_v50 = vpop.f32.mrb[37].mxu0  ;;  %2596 = vmatprep.subr.bf16.mxu0 %v2778_v43  ;;  %v2782_v1 = vld [vmem:[#allocation5 + $0x1c8] sm:$0xff]   ;;  %v2783_v0 = vld [vmem:[#allocation5 + $0x1d0] sm:$0xff]   ;;  %v3385_v5 = vld [vmem:[#allocation7 + $0x5] ss:$0 sm:$0xff] }
 0x572   : > { %v1320_v51 = vadd.f32 %v3367_v34, %v1319_v50  ;;  %v2545_v52 = vpop.f32.mrb[38].mxu0  ;;  %v1398_v53 = vpack.c.bf16 %v1383_v47, %v1382_v2  ;;  %2597 = vmatpush3.bf16.msra.mxu0 %v2778_v43  ;;  %v2784_v2 = vld [vmem:[#allocation5 + $0x1d8] sm:$0xff]   ;;  %v2785_v47 = vld [vmem:[#allocation5 + $0x1e0] sm:$0xff]  }
 0x573   : > { %v1372_v54 = vmul.f32 0.2, %v1328_v49  ;;  %v1331_v46 = vadd.f32 %v2545_v52, %v3367_v34  ;;  %v1322_v55 = vpop.f32.mrb[39].mxu0  ;;  %2598 = vmatprep.subr.bf16.mxu0 %v2779_v44 }
 0x574   : > { %v1370_v8 = vmul.f32 0.2, %v1320_v51  ;;  %v1323_v56 = vadd.f32 %v3367_v34, %v1322_v55  ;;  %2570 = vmatprep.mubr.bf16.mxu1 %v1398_v53 }
 0x575   : > { %v1373_v57 = vmul.f32 0.2, %v1331_v46  ;;  %2571 = vmatmul.mubr.bf16.vlgmr.msra.gmra.mrb[32].mxu1 %v1399_v48  ;;  %v1388_v59 = vmax.f32 %v1328_v49, %v1372_v54 }
 0x576   : > { %v1371_v58 = vmul.f32 0.2, %v1323_v56  ;;  %v1386_v61 = vmax.f32 %v1320_v51, %v1370_v8  ;;  %2599 = vmatpush3.bf16.msra.mxu0 %v2779_v44 }
 0x577   : > { %v1389_v60 = vmax.f32 %v1331_v46, %v1373_v57  ;;  %2600 = vmatprep.subr.bf16.mxu0 %v2780_v45 }
 0x578   : > { %v1387_v62 = vmax.f32 %v1323_v56, %v1371_v58  ;;  %v2548_v10 = vpop.f32.mrb[40].mxu0 }
 0x579   : > { %v1344_v63 = vadd.f32 %v2548_v10, %v3367_v34  ;;  %v1335_v3 = vpop.f32.mrb[41].mxu0  ;;  %v1401_v4 = vpack.c.bf16 %v1389_v60, %v1388_v59 }
 0x57a   : > { %v1336_v11 = vadd.f32 %v3367_v34, %v1335_v3  ;;  %v2549_v6 = vpop.f32.mrb[42].mxu0  ;;  %v1400_v7 = vpack.c.bf16 %v1387_v62, %v1386_v61  ;;  %2601 = vmatpush3.bf16.msra.mxu0 %v2780_v45 }
 0x57b   : > { %v1376_v9 = vmul.f32 0.2, %v1344_v63  ;;  %v1347_v12 = vadd.f32 %v2549_v6, %v3367_v34  ;;  %v1338_v13 = vpop.f32.mrb[43].mxu0 }
 0x57c   : > { %v1374_v16 = vmul.f32 0.2, %v1336_v11  ;;  %v1339_v14 = vadd.f32 %v3367_v34, %v1338_v13  ;;  %2574 = vmatprep.mubr.bf16.mxu1 %v1400_v7 }
 0x57d   : > { %v1377_v15 = vmul.f32 0.2, %v1347_v12  ;;  %2575 = vmatmul.mubr.bf16.gmra.mrb[36].mxu1 %v1401_v4  ;;  %v1392_v19 = vmax.f32 %v1344_v63, %v1376_v9 }
 0x57e   : > { %v1375_v18 = vmul.f32 0.2, %v1339_v14  ;;  %v1390_v22 = vmax.f32 %v1336_v11, %v1374_v16 }
 0x57f   : > { %v1393_v20 = vmax.f32 %v1347_v12, %v1377_v15 }
 0x580   : > { %v1391_v21 = vmax.f32 %v1339_v14, %v1375_v18  ;;  %v2552_v25 = vpop.f32.mrb[44].mxu0 }
 0x581   : > { %v1360_v26 = vadd.f32 %v2552_v25, %v3367_v34  ;;  %v1351_v23 = vpop.f32.mrb[45].mxu0  ;;  %v1403_v30 = vpack.c.bf16 %v1393_v20, %v1392_v19 }
 0x582   : > { %v1352_v31 = vadd.f32 %v3367_v34, %v1351_v23  ;;  %v2553_v24 = vpop.f32.mrb[46].mxu0  ;;  %v1402_v17 = vpack.c.bf16 %v1391_v21, %v1390_v22 }
 0x583   : > { %v1380_v28 = vmul.f32 0.2, %v1360_v26  ;;  %v1363_v29 = vadd.f32 %v2553_v24, %v3367_v34  ;;  %v1354_v32 = vpop.f32.mrb[47].mxu0 }
 0x584   : > { %v1378_v33 = vmul.f32 0.2, %v1352_v31  ;;  %v1355_v35 = vadd.f32 %v3367_v34, %v1354_v32  ;;  %2578 = vmatprep.mubr.bf16.mxu1 %v1402_v17  ;;  %v2781_v34 = vld [vmem:[#allocation5 + $0x1c0] sm:$0xff]  }
 0x585   : > { %v1381_v36 = vmul.f32 0.2, %v1363_v29  ;;  %2579 = vmatmul.mubr.bf16.gmra.mrb[40].mxu1 %v1403_v30  ;;  %v1396_v38 = vmax.f32 %v1360_v26, %v1380_v28  ;;  %2618 = vmatprep.subr.bf16.mxu1 %v2781_v34 }
 0x586   : > { %v1379_v37 = vmul.f32 0.2, %v1355_v35  ;;  %v1394_v40 = vmax.f32 %v1352_v31, %v1378_v33  ;;  %2619 = vmatpush3.bf16.msra.mxu1 %v2781_v34 }
 0x587   : > { %v1397_v39 = vmax.f32 %v1363_v29, %v1381_v36  ;;  %2620 = vmatprep.subr.bf16.mxu1 %v2782_v1 }
 0x588   : > { %v1395_v41 = vmax.f32 %v1355_v35, %v1379_v37 }
 0x589   : > { %v1405_v27 = vpack.c.bf16 %v1397_v39, %v1396_v38 }
 0x58a   : > { %v1404_v42 = vpack.c.bf16 %v1395_v41, %v1394_v40  ;;  %2621 = vmatpush3.bf16.msra.mxu1 %v2782_v1 }
 0x58b   : > { %2622 = vmatprep.subr.bf16.mxu1 %v2783_v0 }
 0x58c   : > { %2582 = vmatprep.mubr.bf16.mxu1 %v1404_v42 }
 0x58d   : > { %2583 = vmatmul.mubr.bf16.gmra.mrb[44].mxu1 %v1405_v27 }
 0x58e   : > { %2623 = vmatpush3.bf16.msra.mxu1 %v2783_v0 }
 0x58f   : > { %2624 = vmatprep.subr.bf16.mxu1 %v2784_v2 }
 0x592   : > { %2625 = vmatpush3.bf16.msra.mxu1 %v2784_v2 }
 0x593   : > { %2626 = vmatprep.subr.bf16.mxu1 %v2785_v47 }
 0x596   : > { %2627 = vmatpush3.bf16.msra.mxu1 %v2785_v47 }
 0x648   : > { %v2572_v48 = vpop.f32.mrb[32].mxu1 }
 0x649   : > { %v1522_v49 = vadd.f32 %v2572_v48, %v3385_v5  ;;  %v1513_v50 = vpop.f32.mrb[33].mxu1 }
 0x64a   : > { %v1514_v51 = vadd.f32 %v3385_v5, %v1513_v50  ;;  %v2573_v52 = vpop.f32.mrb[34].mxu1 }
 0x64b   : > { %v1578_v53 = vmul.f32 0.2, %v1522_v49  ;;  %v1525_v54 = vadd.f32 %v2573_v52, %v3385_v5  ;;  %v1516_v46 = vpop.f32.mrb[35].mxu1 }
 0x64c   : > { %v1576_v55 = vmul.f32 0.2, %v1514_v51  ;;  %v1517_v8 = vadd.f32 %v3385_v5, %v1516_v46 }
 0x64d   : > { %v1579_v56 = vmul.f32 0.2, %v1525_v54  ;;  %v1594_v58 = vmax.f32 %v1522_v49, %v1578_v53 }
 0x64e   : > { %v1577_v57 = vmul.f32 0.2, %v1517_v8  ;;  %v1592_v60 = vmax.f32 %v1514_v51, %v1576_v55 }
 0x64f   : > { %v1595_v59 = vmax.f32 %v1525_v54, %v1579_v56  ;;  %v2787_v56 = vld [vmem:[#allocation5 + $0x1f0] sm:$0xff]  }
 0x650   : > { %v1593_v61 = vmax.f32 %v1517_v8, %v1577_v57  ;;  %v2576_v62 = vpop.f32.mrb[36].mxu1  ;;  %v2786_v8 = vld [vmem:[#allocation5 + $0x1e8] sm:$0xff]   ;;  %v2788_v57 = vld [vmem:[#allocation5 + $0x1f8] sm:$0xff]  }
 0x651   : > { %v1609_v10 = vpack.c.bf16 %v1595_v59, %v1594_v58  ;;  %v1538_v63 = vadd.f32 %v2576_v62, %v3385_v5  ;;  %v1529_v3 = vpop.f32.mrb[37].mxu1  ;;  %2628 = vmatprep.subr.bf16.mxu1 %v2786_v8 }
 0x652   : > { %v1530_v4 = vadd.f32 %v3385_v5, %v1529_v3  ;;  %v2577_v11 = vpop.f32.mrb[38].mxu1  ;;  %v1608_v6 = vpack.c.bf16 %v1593_v61, %v1592_v60  ;;  %2629 = vmatpush3.bf16.msra.mxu1 %v2786_v8 }
 0x653   : > { %v1582_v7 = vmul.f32 0.2, %v1538_v63  ;;  %v1541_v9 = vadd.f32 %v2577_v11, %v3385_v5  ;;  %v1532_v12 = vpop.f32.mrb[39].mxu1  ;;  %2630 = vmatprep.subr.bf16.mxu1 %v2787_v56 }
 0x654   : > { %v1580_v13 = vmul.f32 0.2, %v1530_v4  ;;  %v1533_v16 = vadd.f32 %v3385_v5, %v1532_v12  ;;  %2602 = vmatprep.mubr.bf16.mxu0 %v1608_v6 }
 0x655   : > { %v1583_v14 = vmul.f32 0.2, %v1541_v9  ;;  %2603 = vmatmul.mubr.bf16.vlgmr.msra.gmra.mrb[48].mxu0 %v1609_v10  ;;  %v1598_v18 = vmax.f32 %v1538_v63, %v1582_v7 }
 0x656   : > { %v1581_v15 = vmul.f32 0.2, %v1533_v16  ;;  %v1596_v20 = vmax.f32 %v1530_v4, %v1580_v13  ;;  %2631 = vmatpush3.bf16.msra.mxu1 %v2787_v56 }
 0x657   : > { %v1599_v19 = vmax.f32 %v1541_v9, %v1583_v14  ;;  %2632 = vmatprep.subr.bf16.mxu1 %v2788_v57 }
 0x658   : > { %v1597_v22 = vmax.f32 %v1533_v16, %v1581_v15  ;;  %v2580_v21 = vpop.f32.mrb[40].mxu1 }
 0x659   : > { %v1554_v25 = vadd.f32 %v2580_v21, %v3385_v5  ;;  %v1545_v26 = vpop.f32.mrb[41].mxu1  ;;  %v1611_v23 = vpack.c.bf16 %v1599_v19, %v1598_v18 }
 0x65a   : > { %v1546_v30 = vadd.f32 %v3385_v5, %v1545_v26  ;;  %v2581_v31 = vpop.f32.mrb[42].mxu1  ;;  %v1610_v24 = vpack.c.bf16 %v1597_v22, %v1596_v20  ;;  %2633 = vmatpush3.bf16.msra.mxu1 %v2788_v57 }
 0x65b   : > { %v1586_v17 = vmul.f32 0.2, %v1554_v25  ;;  %v1557_v28 = vadd.f32 %v2581_v31, %v3385_v5  ;;  %v1548_v29 = vpop.f32.mrb[43].mxu1 }
 0x65c   : > { %v1584_v32 = vmul.f32 0.2, %v1546_v30  ;;  %v1549_v33 = vadd.f32 %v3385_v5, %v1548_v29  ;;  %2606 = vmatprep.mubr.bf16.mxu0 %v1610_v24 }
 0x65d   : > { %v1587_v35 = vmul.f32 0.2, %v1557_v28  ;;  %2607 = vmatmul.mubr.bf16.gmra.mrb[52].mxu0 %v1611_v23  ;;  %v1602_v37 = vmax.f32 %v1554_v25, %v1586_v17 }
 0x65e   : > { %v1585_v36 = vmul.f32 0.2, %v1549_v33  ;;  %v1600_v39 = vmax.f32 %v1546_v30, %v1584_v32 }
 0x65f   : > { %v1603_v38 = vmax.f32 %v1557_v28, %v1587_v35 }
 0x660   : > { %v1601_v40 = vmax.f32 %v1549_v33, %v1585_v36  ;;  %v2584_v41 = vpop.f32.mrb[44].mxu1 }
 0x661   : > { %v1570_v27 = vadd.f32 %v2584_v41, %v3385_v5  ;;  %v1561_v42 = vpop.f32.mrb[45].mxu1  ;;  %v1613_v43 = vpack.c.bf16 %v1603_v38, %v1602_v37 }
 0x662   : > { %v1562_v44 = vadd.f32 %v3385_v5, %v1561_v42  ;;  %v2585_v45 = vpop.f32.mrb[46].mxu1  ;;  %v1612_v34 = vpack.c.bf16 %v1601_v40, %v1600_v39 }
 0x663   : > { %v1590_v1 = vmul.f32 0.2, %v1570_v27  ;;  %v1573_v0 = vadd.f32 %v2585_v45, %v3385_v5  ;;  %v1564_v2 = vpop.f32.mrb[47].mxu1 }
 0x664   : > { %v1588_v47 = vmul.f32 0.2, %v1562_v44  ;;  %v1565_v48 = vadd.f32 %v3385_v5, %v1564_v2  ;;  %2610 = vmatprep.mubr.bf16.mxu0 %v1612_v34  ;;  %v3403_v5 = vld [vmem:[#allocation7 + $0x6] ss:$0 sm:$0xff] }
 0x665   : > { %v1591_v49 = vmul.f32 0.2, %v1573_v0  ;;  %2611 = vmatmul.mubr.bf16.gmra.mrb[56].mxu0 %v1613_v43  ;;  %v1606_v51 = vmax.f32 %v1570_v27, %v1590_v1 }
 0x666   : > { %v1589_v50 = vmul.f32 0.2, %v1565_v48  ;;  %v1604_v53 = vmax.f32 %v1562_v44, %v1588_v47 }
 0x667   : > { %v1607_v52 = vmax.f32 %v1573_v0, %v1591_v49 }
 0x668   : > { %v1605_v54 = vmax.f32 %v1565_v48, %v1589_v50 }
 0x669   : > { %v1615_v46 = vpack.c.bf16 %v1607_v52, %v1606_v51 }
 0x66a   : > { %v1614_v55 = vpack.c.bf16 %v1605_v54, %v1604_v53 }
 0x66c   : > { %2614 = vmatprep.mubr.bf16.mxu0 %v1614_v55 }
 0x66d   : > { %2615 = vmatmul.mubr.bf16.gmra.mrb[60].mxu0 %v1615_v46 }
 0x728   : > { %v2604_v58 = vpop.f32.mrb[48].mxu0 }
 0x729   : > { %v1732_v59 = vadd.f32 %v2604_v58, %v3403_v5  ;;  %v1723_v60 = vpop.f32.mrb[49].mxu0 }
 0x72a   : > { %v1724_v61 = vadd.f32 %v3403_v5, %v1723_v60  ;;  %v2605_v62 = vpop.f32.mrb[50].mxu0 }
 0x72b   : > { %v1788_v10 = vmul.f32 0.2, %v1732_v59  ;;  %v1735_v63 = vadd.f32 %v2605_v62, %v3403_v5  ;;  %v1726_v3 = vpop.f32.mrb[51].mxu0 }
 0x72c   : > { %v1786_v4 = vmul.f32 0.2, %v1724_v61  ;;  %v1727_v11 = vadd.f32 %v3403_v5, %v1726_v3 }
 0x72d   : > { %v1789_v6 = vmul.f32 0.2, %v1735_v63  ;;  %v1804_v9 = vmax.f32 %v1732_v59, %v1788_v10 }
 0x72e   : > { %v1787_v7 = vmul.f32 0.2, %v1727_v11  ;;  %v1802_v13 = vmax.f32 %v1724_v61, %v1786_v4 }
 0x72f   : > { %v1805_v12 = vmax.f32 %v1735_v63, %v1789_v6 }
 0x730   : > { %v1803_v16 = vmax.f32 %v1727_v11, %v1787_v7  ;;  %v2608_v14 = vpop.f32.mrb[52].mxu0  ;;  %v3421_v11 = vld [vmem:[#allocation7 + $0x7] ss:$0 sm:$0xff] }
 0x731   : > { %v1819_v15 = vpack.c.bf16 %v1805_v12, %v1804_v9  ;;  %v1748_v18 = vadd.f32 %v2608_v14, %v3403_v5  ;;  %v1739_v19 = vpop.f32.mrb[53].mxu0 }
 0x732   : > { %v1740_v20 = vadd.f32 %v3403_v5, %v1739_v19  ;;  %v2609_v22 = vpop.f32.mrb[54].mxu0  ;;  %v1818_v21 = vpack.c.bf16 %v1803_v16, %v1802_v13 }
 0x733   : > { %v1792_v25 = vmul.f32 0.2, %v1748_v18  ;;  %v1751_v26 = vadd.f32 %v2609_v22, %v3403_v5  ;;  %v1742_v23 = vpop.f32.mrb[55].mxu0 }
 0x734   : > { %v1790_v30 = vmul.f32 0.2, %v1740_v20  ;;  %v1743_v31 = vadd.f32 %v3403_v5, %v1742_v23  ;;  %2634 = vmatprep.mubr.bf16.mxu1 %v1818_v21 }
 0x735   : > { %v1793_v24 = vmul.f32 0.2, %v1751_v26  ;;  %2635 = vmatmul.mubr.bf16.vlgmr.msra.gmra.mrb[48].mxu1 %v1819_v15  ;;  %v1808_v28 = vmax.f32 %v1748_v18, %v1792_v25 }
 0x736   : > { %v1791_v17 = vmul.f32 0.2, %v1743_v31  ;;  %v1806_v32 = vmax.f32 %v1740_v20, %v1790_v30 }
 0x737   : > { %v1809_v29 = vmax.f32 %v1751_v26, %v1793_v24 }
 0x738   : > { %v1807_v33 = vmax.f32 %v1743_v31, %v1791_v17  ;;  %v2612_v35 = vpop.f32.mrb[56].mxu0 }
 0x739   : > { %v1764_v36 = vadd.f32 %v2612_v35, %v3403_v5  ;;  %v1755_v37 = vpop.f32.mrb[57].mxu0  ;;  %v1821_v38 = vpack.c.bf16 %v1809_v29, %v1808_v28 }
 0x73a   : > { %v1756_v39 = vadd.f32 %v3403_v5, %v1755_v37  ;;  %v2613_v40 = vpop.f32.mrb[58].mxu0  ;;  %v1820_v41 = vpack.c.bf16 %v1807_v33, %v1806_v32 }
 0x73b   : > { %v1796_v27 = vmul.f32 0.2, %v1764_v36  ;;  %v1767_v42 = vadd.f32 %v2613_v40, %v3403_v5  ;;  %v1758_v43 = vpop.f32.mrb[59].mxu0 }
 0x73c   : > { %v1794_v44 = vmul.f32 0.2, %v1756_v39  ;;  %v1759_v45 = vadd.f32 %v3403_v5, %v1758_v43  ;;  %2638 = vmatprep.mubr.bf16.mxu1 %v1820_v41 }
 0x73d   : > { %v1797_v34 = vmul.f32 0.2, %v1767_v42  ;;  %2639 = vmatmul.mubr.bf16.gmra.mrb[52].mxu1 %v1821_v38  ;;  %v1812_v0 = vmax.f32 %v1764_v36, %v1796_v27 }
 0x73e   : > { %v1795_v1 = vmul.f32 0.2, %v1759_v45  ;;  %v1810_v47 = vmax.f32 %v1756_v39, %v1794_v44 }
 0x73f   : > { %v1813_v2 = vmax.f32 %v1767_v42, %v1797_v34 }
 0x740   : > { %v1811_v48 = vmax.f32 %v1759_v45, %v1795_v1  ;;  %v2616_v49 = vpop.f32.mrb[60].mxu0 }
 0x741   : > { %v1780_v50 = vadd.f32 %v2616_v49, %v3403_v5  ;;  %v1771_v51 = vpop.f32.mrb[61].mxu0  ;;  %v1823_v52 = vpack.c.bf16 %v1813_v2, %v1812_v0 }
 0x742   : > { %v1772_v53 = vadd.f32 %v3403_v5, %v1771_v51  ;;  %v2617_v54 = vpop.f32.mrb[62].mxu0  ;;  %v1822_v46 = vpack.c.bf16 %v1811_v48, %v1810_v47 }
 0x743   : > { %v1800_v55 = vmul.f32 0.2, %v1780_v50  ;;  %v1783_v8 = vadd.f32 %v2617_v54, %v3403_v5  ;;  %v1774_v56 = vpop.f32.mrb[63].mxu0 }
 0x744   : > { %v1798_v57 = vmul.f32 0.2, %v1772_v53  ;;  %v1775_v58 = vadd.f32 %v3403_v5, %v1774_v56  ;;  %2642 = vmatprep.mubr.bf16.mxu1 %v1822_v46 }
 0x745   : > { %v1801_v59 = vmul.f32 0.2, %v1783_v8  ;;  %2643 = vmatmul.mubr.bf16.gmra.mrb[56].mxu1 %v1823_v52  ;;  %v1816_v61 = vmax.f32 %v1780_v50, %v1800_v55 }
 0x746   : > { %v1799_v60 = vmul.f32 0.2, %v1775_v58  ;;  %v1814_v10 = vmax.f32 %v1772_v53, %v1798_v57 }
 0x747   : > { %v1817_v62 = vmax.f32 %v1783_v8, %v1801_v59 }
 0x748   : > { %v1815_v63 = vmax.f32 %v1775_v58, %v1799_v60 }
 0x749   : > { %v1825_v3 = vpack.c.bf16 %v1817_v62, %v1816_v61 }
 0x74a   : > { %v1824_v4 = vpack.c.bf16 %v1815_v63, %v1814_v10 }
 0x74c   : > { %2646 = vmatprep.mubr.bf16.mxu1 %v1824_v4 }
 0x74d   : > { %2647 = vmatmul.mubr.bf16.gmra.mrb[60].mxu1 %v1825_v3 }
 0x808   : > { %v2636_v6 = vpop.f32.mrb[48].mxu1 }
 0x809   : > { %v1942_v7 = vadd.f32 %v2636_v6, %v3421_v11  ;;  %v1933_v9 = vpop.f32.mrb[49].mxu1 }
 0x80a   : > { %v1934_v5 = vadd.f32 %v3421_v11, %v1933_v9  ;;  %v2637_v12 = vpop.f32.mrb[50].mxu1 }
 0x80b   : > { %v1998_v13 = vmul.f32 0.2, %v1942_v7  ;;  %v1945_v16 = vadd.f32 %v2637_v12, %v3421_v11  ;;  %v1936_v14 = vpop.f32.mrb[51].mxu1 }
 0x80c   : > { %v1996_v15 = vmul.f32 0.2, %v1934_v5  ;;  %v1937_v18 = vadd.f32 %v3421_v11, %v1936_v14 }
 0x80d   : > { %v1999_v19 = vmul.f32 0.2, %v1945_v16  ;;  %v2014_v22 = vmax.f32 %v1942_v7, %v1998_v13 }
 0x80e   : > { %v1997_v20 = vmul.f32 0.2, %v1937_v18  ;;  %v2012_v25 = vmax.f32 %v1934_v5, %v1996_v15 }
 0x80f   : > { %v2015_v21 = vmax.f32 %v1945_v16, %v1999_v19 }
 0x810   : > { %v2013_v26 = vmax.f32 %v1937_v18, %v1997_v20  ;;  %v2640_v23 = vpop.f32.mrb[52].mxu1 }
 0x811   : > { %v2029_v30 = vpack.c.bf16 %v2015_v21, %v2014_v22  ;;  %v1958_v31 = vadd.f32 %v2640_v23, %v3421_v11  ;;  %v1949_v24 = vpop.f32.mrb[53].mxu1 }
 0x812   : > { %v2028_v17 = vpack.c.bf16 %v2013_v26, %v2012_v25  ;;  %v1950_v28 = vadd.f32 %v3421_v11, %v1949_v24  ;;  %v2641_v29 = vpop.f32.mrb[54].mxu1 }
 0x813   : > { %v2038_v32 = vunpack.c.l.bf16 %v2029_v30  ;;  %v2039_v33 = vunpack.c.h.bf16 %v2029_v30  ;;  %v2002_v35 = vmul.f32 0.2, %v1958_v31  ;;  %v1961_v36 = vadd.f32 %v2641_v29, %v3421_v11  ;;  %v1952_v37 = vpop.f32.mrb[55].mxu1 }
 0x814   : > { %v2036_v38 = vunpack.c.l.bf16 %v2028_v17  ;;  %v2037_v39 = vunpack.c.h.bf16 %v2028_v17  ;;  %v2000_v40 = vmul.f32 0.2, %v1950_v28  ;;  %v1953_v41 = vadd.f32 %v3421_v11, %v1952_v37 }
 0x815   : > { %2054 = vst [vmem:[%s3433_s18 + $0x10] sm:$0xff] %v2038_v32  ;;  %2055 = vst [vmem:[%s3433_s18 + $0x18] sm:$0xff] %v2039_v33  ;;  %v2003_v27 = vmul.f32 0.2, %v1961_v36  ;;  %v2018_v43 = vmax.f32 %v1958_v31, %v2002_v35 }
 0x816   : > { %2052 = vst [vmem:[%s3433_s18] sm:$0xff] %v2036_v38  ;;  %2053 = vst [vmem:[%s3433_s18 + $0x8] sm:$0xff] %v2037_v39  ;;  %v2001_v42 = vmul.f32 0.2, %v1953_v41  ;;  %v2016_v45 = vmax.f32 %v1950_v28, %v2000_v40 }
 0x817   : > { %v2019_v44 = vmax.f32 %v1961_v36, %v2003_v27 }
 0x818   : > { %v2017_v34 = vmax.f32 %v1953_v41, %v2001_v42  ;;  %v2644_v1 = vpop.f32.mrb[56].mxu1 }
 0x819   : > { %v2031_v0 = vpack.c.bf16 %v2019_v44, %v2018_v43  ;;  %v1974_v2 = vadd.f32 %v2644_v1, %v3421_v11  ;;  %v1965_v47 = vpop.f32.mrb[57].mxu1 }
 0x81a   : > { %v2030_v48 = vpack.c.bf16 %v2017_v34, %v2016_v45  ;;  %v1966_v49 = vadd.f32 %v3421_v11, %v1965_v47  ;;  %v2645_v50 = vpop.f32.mrb[58].mxu1 }
 0x81b   : > { %v2042_v51 = vunpack.c.l.bf16 %v2031_v0  ;;  %v2043_v52 = vunpack.c.h.bf16 %v2031_v0  ;;  %v2006_v53 = vmul.f32 0.2, %v1974_v2  ;;  %v1977_v54 = vadd.f32 %v2645_v50, %v3421_v11  ;;  %v1968_v46 = vpop.f32.mrb[59].mxu1 }
 0x81c   : > { %v2040_v55 = vunpack.c.l.bf16 %v2030_v48  ;;  %v2041_v8 = vunpack.c.h.bf16 %v2030_v48  ;;  %v2004_v56 = vmul.f32 0.2, %v1966_v49  ;;  %v1969_v57 = vadd.f32 %v3421_v11, %v1968_v46 }
 0x81d   : > { %2058 = vst [vmem:[%s3433_s18 + $0x30] sm:$0xff] %v2042_v51  ;;  %2059 = vst [vmem:[%s3433_s18 + $0x38] sm:$0xff] %v2043_v52  ;;  %v2007_v58 = vmul.f32 0.2, %v1977_v54  ;;  %v2022_v60 = vmax.f32 %v1974_v2, %v2006_v53 }
 0x81e   : > { %2056 = vst [vmem:[%s3433_s18 + $0x20] sm:$0xff] %v2040_v55  ;;  %2057 = vst [vmem:[%s3433_s18 + $0x28] sm:$0xff] %v2041_v8  ;;  %v2005_v59 = vmul.f32 0.2, %v1969_v57  ;;  %v2020_v62 = vmax.f32 %v1966_v49, %v2004_v56 }
 0x81f   : > { %v2023_v61 = vmax.f32 %v1977_v54, %v2007_v58 }
 0x820   : > { %v2021_v10 = vmax.f32 %v1969_v57, %v2005_v59  ;;  %v2648_v63 = vpop.f32.mrb[60].mxu1 }
 0x821   : > { %v2033_v3 = vpack.c.bf16 %v2023_v61, %v2022_v60  ;;  %v1990_v4 = vadd.f32 %v2648_v63, %v3421_v11  ;;  %v1981_v6 = vpop.f32.mrb[61].mxu1 }
 0x822   : > { %v2032_v7 = vpack.c.bf16 %v2021_v10, %v2020_v62  ;;  %v1982_v9 = vadd.f32 %v3421_v11, %v1981_v6  ;;  %v2649_v5 = vpop.f32.mrb[62].mxu1 }
 0x823   : > { %v2046_v12 = vunpack.c.l.bf16 %v2033_v3  ;;  %v2047_v13 = vunpack.c.h.bf16 %v2033_v3  ;;  %v2010_v16 = vmul.f32 0.2, %v1990_v4  ;;  %v1993_v14 = vadd.f32 %v2649_v5, %v3421_v11  ;;  %v1984_v15 = vpop.f32.mrb[63].mxu1 }
 0x824   : > { %v2044_v18 = vunpack.c.l.bf16 %v2032_v7  ;;  %v2045_v19 = vunpack.c.h.bf16 %v2032_v7  ;;  %v2008_v20 = vmul.f32 0.2, %v1982_v9  ;;  %v1985_v22 = vadd.f32 %v3421_v11, %v1984_v15 }
 0x825   : > { %2062 = vst [vmem:[%s3433_s18 + $0x50] sm:$0xff] %v2046_v12  ;;  %2063 = vst [vmem:[%s3433_s18 + $0x58] sm:$0xff] %v2047_v13  ;;  %v2011_v21 = vmul.f32 0.2, %v1993_v14  ;;  %v2026_v26 = vmax.f32 %v1990_v4, %v2010_v16 }
 0x826   : > { %2060 = vst [vmem:[%s3433_s18 + $0x40] sm:$0xff] %v2044_v18  ;;  %2061 = vst [vmem:[%s3433_s18 + $0x48] sm:$0xff] %v2045_v19  ;;  %v2009_v25 = vmul.f32 0.2, %v1985_v22  ;;  %v2024_v30 = vmax.f32 %v1982_v9, %v2008_v20 }
 0x827   : > { %v2027_v23 = vmax.f32 %v1993_v14, %v2011_v21 }
 0x828   : > { %v2025_v31 = vmax.f32 %v1985_v22, %v2009_v25 }
 0x829   : > { %v2035_v24 = vpack.c.bf16 %v2027_v23, %v2026_v26 }
 0x82a   : > { %v2034_v11 = vpack.c.bf16 %v2025_v31, %v2024_v30 }
 0x82b   : > { %v2050_v17 = vunpack.c.l.bf16 %v2035_v24  ;;  %v2051_v28 = vunpack.c.h.bf16 %v2035_v24 }
 0x82c   : > { %v2048_v29 = vunpack.c.l.bf16 %v2034_v11  ;;  %v2049_v32 = vunpack.c.h.bf16 %v2034_v11 }
 0x82d   : > { %2066 = vst [vmem:[%s3433_s18 + $0x70] sm:$0xff] %v2050_v17  ;;  %2067 = vst [vmem:[%s3433_s18 + $0x78] sm:$0xff] %v2051_v28 }
 0x82e   : > { %2064 = vst [vmem:[%s3433_s18 + $0x60] sm:$0xff] %v2048_v29  ;;  %2065 = vst [vmem:[%s3433_s18 + $0x68] sm:$0xff] %v2049_v32 }
 0x82f   : > { %2920 = shalt.err (!%p2917_p2)
}
 0x830   : > { %s2921_s25 = scalar_lea.hbm %s3460_s22, 2048  ;;  %s2925_s26 = scalar_lea.hbm %s3513_s3, 4096 }
 0x831   : > { %p2922_p13 = scmp.ne.s32.totalorder %s3460_s22, %s2921_s25  ;;  %p2926_p4 = scmp.lt.u32.totalorder %s3460_s22, %s3513_s3 }
 0x832   : > { %p2927_p7 = scmp.lt.u32.totalorder %s2925_s26, %s2921_s25  ;;  %p2929_p11 = scmp.lt.u32.totalorder %s2921_s25, %s3460_s22 }
 0x833   : > { %p2923_p6 = pnand %p2922_p13, %p3527_p0 }
 0x834   : > { %p2928_p8 = por %p2927_p7, %p2926_p4 }
 0x835   : > { %p2924_p10 = pneg %p2923_p6 }
 0x836   : > { %p2930_p1 = por %p2929_p11, %p2928_p8 }
 0x838   : > { %p2931_p3 = pnand %p2930_p1, %p2924_p10 }
 0x83a   : > { %2934 = shalt.err (!%p2931_p3)
}
 0x83b   : > { %s2989_s5 = smov 128   ;;  %s2990_s18 = smov 8  }
 0x83c   : > { %2660 = dma.vmem_to_hbm [thread:$0]  (%p3527_p0), %s3462_s24, 2048, %s3460_s22, %s2069_s16, %s2989_s5, %s2989_s5, %s2990_s18  }
 0x83d PF: > { %s2097_s20 = sand.u32 1, %s2965_s12   ;;  %p3528_p5 = scmp.ne.s32.totalorder %s3518_s19, 0 }
 0x83e   : > { %p3529_p9 = scmp.ge.s32.totalorder %s2977_s15, 2  ;;  %s2098_s27 = scalar_lea.sflag [#allocation4], %s2097_s20 }
 0x840   : > { %p2674_p12 = pnand %p3529_p9, %p3528_p5 }
 0x842   : > { %2960 = dma.done.wait (!%p2674_p12), %s2098_s27, 2048  }
 0x843   : > { %2962 = vsyncadd (!%p2674_p12), %s2098_s27, 4294965248  ;;  %p17_p2 = scmp.ge.s32.totalorder %s3121_s6, 4   ;;  %s3530_s12 = smov %s2969_s13 }
 0x844   : > { %s3531_s13 = smov %s2973_s14  ;;  %s3532_s14 = smov %s3130_s9 }
 0x845   : > { %s3533_s15 = smov %s3121_s6  ;;  %19 = sbr.rel (!%p17_p2) target bundleno = 6 (0x6), region = 99 }
 0x84c   :  { %2103 = vsyncpa [#allocation3], 1 }
 0x84d   :  { %2105 = vsyncpa [#allocation3 + $0x1], 1 }
 0x84e   :  { %2106 = vsyncpa [#allocation6], 1 }
 0x84f   :  { %2107 = vsyncpa [#allocation4], 1 }
 0x850   :  { %2109 = vsyncpa [#allocation4 + $0x1], 1 }

</bundles_post_ra>
